<compile_context>
chip_gen: v7x
topology: tpu7x:2x2x1
jax: 0.10.0
libtpu: 0.0.40
codegen_flags: <defaults>
</compile_context>

<pallas_src>
import functools
import math

import jax
import jax.numpy as jnp
from jax.experimental import pallas as pl
from jax.experimental.pallas import tpu as pltpu


def _round_up(x, m):
    return ((x + m - 1) // m) * m


# ---------------------------------------------------------------------------
# Kernels
# ---------------------------------------------------------------------------
def _feature_matmul_kernel(x_ref, w_ref, xw_ref):
    # XW = X @ W1, hoisted out of the A-contraction loop.  Output is bf16:
    # it is only ever consumed as an MXU operand of the f32-accumulated
    # A passes.
    xw_ref[...] = jnp.dot(
        x_ref[...], w_ref[...], preferred_element_type=jnp.float32
    ).astype(xw_ref.dtype)


def _conv1_project_kernel(a_ref, xw_ref, b1_ref, wcat_ref, hw_ref, acc_ref):
    # acc[i] = sum_k A[i, k] @ XW[k]           (f32 accumulation)
    # last k step:
    #   h  = relu(acc + b1)                    (conv1 output, stays in VMEM)
    #   HW = h @ [W_mu | W_logstd]             (fused projection -> bf16)
    k = pl.program_id(1)

    @pl.when(k == 0)
    def _():
        acc_ref[...] = jnp.zeros_like(acc_ref)

    acc_ref[...] += jnp.dot(
        a_ref[...], xw_ref[...], preferred_element_type=jnp.float32)

    @pl.when(k == pl.num_programs(1) - 1)
    def _():
        h = jnp.maximum(acc_ref[...] + b1_ref[...], 0.0)
        hw_ref[...] = jnp.dot(
            h, wcat_ref[...], preferred_element_type=jnp.float32
        ).astype(hw_ref.dtype)


def _conv_out_kernel(a_ref, hw_ref, bcat_ref, z_ref, acc_ref):
    # Z[i] = sum_k A[i, k] @ HW[k] + [b_mu | b_logstd]
    k = pl.program_id(1)

    @pl.when(k == 0)
    def _():
        acc_ref[...] = jnp.zeros_like(acc_ref)

    acc_ref[...] += jnp.dot(
        a_ref[...], hw_ref[...], preferred_element_type=jnp.float32)

    @pl.when(k == pl.num_programs(1) - 1)
    def _():
        z_ref[...] = (acc_ref[...] + bcat_ref[...]).astype(z_ref.dtype)


# ---------------------------------------------------------------------------
# Wrapper
# ---------------------------------------------------------------------------
def vgcn_encoder(a_hat, x, params, *, tm=256, tk=512):
    """Variational GCN encoder forward. Returns (mu, logstd), each [N, Cout].

    a_hat : [N, N] dense symmetric-normalized adjacency (f32)
    x     : [N, Cin] node features (f32)
    tm/tk : row / contraction tile of A (multiples of 16 / 128).
    """
    n, cin = x.shape
    hidden = params["w1"].shape[1]
    c_out = params["w_mu"].shape[1]
    width = 2 * c_out                        # mu | logstd concatenated

    assert tm % 16 == 0 and tk % 128 == 0, "tiles must be lane/sublane aligned"

    n_pad = _round_up(n, math.lcm(tm, tk))
    pad = n_pad - n

    # bf16 operands for the A passes (halves HBM bytes of the dominant A
    # stream); all accumulation stays f32 via preferred_element_type.
    # TODO(synk): for real sparse graphs, replace the dense A stream with a
    # PrefetchScalarGridSpec block-sparse scheme (per-row-tile neighbor block
    # ids prefetched into SMEM; skip zero (tm, tk) tiles of A).
    a_p = jnp.pad(a_hat, ((0, pad), (0, pad))).astype(jnp.bfloat16)
    x_p = jnp.pad(x, ((0, pad), (0, 0))).astype(jnp.float32)

    w_cat = jnp.concatenate([params["w_mu"], params["w_logstd"]], axis=1)
    b_cat = jnp.concatenate([params["b_mu"], params["b_logstd"]], axis=1)

    grid_rows = n_pad // tm
    grid_k = n_pad // tk

    # --- hoisted feature transform: XW = X @ W1  ([N, hidden], bf16) --------
    xw = pl.pallas_call(
        _feature_matmul_kernel,
        out_shape=jax.ShapeDtypeStruct((n_pad, hidden), jnp.bfloat16),
        grid=(grid_rows,),
        in_specs=[pl.BlockSpec((tm, cin), lambda i: (i, 0)),
                  pl.BlockSpec((cin, hidden), lambda i: (0, 0))],
        out_specs=pl.BlockSpec((tm, hidden), lambda i: (i, 0)),
        compiler_params=pltpu.CompilerParams(
            dimension_semantics=("parallel",)),
    )(x_p, params["w1"])

    # --- pass 1 over A: HW = relu(A @ XW + b1) @ [W_mu | W_logstd] ----------
    hw = pl.pallas_call(
        _conv1_project_kernel,
        out_shape=jax.ShapeDtypeStruct((n_pad, width), jnp.bfloat16),
        grid=(grid_rows, grid_k),
        in_specs=[pl.BlockSpec((tm, tk), lambda i, k: (i, k)),       # A tile
                  pl.BlockSpec((tk, hidden), lambda i, k: (k, 0)),   # XW tile
                  pl.BlockSpec((1, hidden), lambda i, k: (0, 0)),    # b1
                  pl.BlockSpec((hidden, width), lambda i, k: (0, 0))],  # Wcat
        out_specs=pl.BlockSpec((tm, width), lambda i, k: (i, 0)),
        scratch_shapes=[pltpu.VMEM((tm, hidden), jnp.float32)],
        compiler_params=pltpu.CompilerParams(
            dimension_semantics=("parallel", "arbitrary")),
        cost_estimate=pl.CostEstimate(
            flops=2 * n_pad * n_pad * hidden + 2 * n_pad * hidden * width,
            transcendentals=0,
            bytes_accessed=2 * n_pad * n_pad + 2 * n_pad * hidden
            + 2 * n_pad * width + 4 * hidden * (width + 1)),
    )(a_p, xw, params["b1"], w_cat)

    # --- pass 2 over A: Z = A @ HW + [b_mu | b_logstd] ----------------------
    z = pl.pallas_call(
        _conv_out_kernel,
        out_shape=jax.ShapeDtypeStruct((n_pad, width), jnp.float32),
        grid=(grid_rows, grid_k),
        in_specs=[pl.BlockSpec((tm, tk), lambda i, k: (i, k)),       # A tile
                  pl.BlockSpec((tk, width), lambda i, k: (k, 0)),    # HW tile
                  pl.BlockSpec((1, width), lambda i, k: (0, 0))],    # b_cat
        out_specs=pl.BlockSpec((tm, width), lambda i, k: (i, 0)),
        scratch_shapes=[pltpu.VMEM((tm, width), jnp.float32)],
        compiler_params=pltpu.CompilerParams(
            dimension_semantics=("parallel", "arbitrary")),
        cost_estimate=pl.CostEstimate(
            flops=2 * n_pad * n_pad * width,
            transcendentals=0,
            bytes_accessed=2 * n_pad * n_pad + 2 * n_pad * width
            + 4 * n_pad * width),
    )(a_p, hw, b_cat)

    mu = z[:n, :c_out]
    logstd = z[:n, c_out:]
    return mu, logstd


# ---------------------------------------------------------------------------
# Plain-JAX glue: dense symmetric-normalized adjacency (GCN normalization).
# Matches PyG gcn_norm on a dense graph: duplicate edges add weight and
# self-loops are only added to nodes without one (add_remaining_self_loops).
# ---------------------------------------------------------------------------
def build_normalized_adjacency(edge_index, num_nodes):
    src = edge_index[0]
    dst = edge_index[1]
    a = jnp.zeros((num_nodes, num_nodes), jnp.float32).at[dst, src].add(1.0)
    needs_loop = jnp.where(jnp.diagonal(a) > 0.0, 0.0, 1.0)
    a = a + jnp.diag(needs_loop)
    deg = jnp.sum(a, axis=1)
    d_inv_sqrt = jnp.where(deg > 0.0, jax.lax.rsqrt(deg), 0.0)
    return a * d_inv_sqrt[:, None] * d_inv_sqrt[None, :]


def init_params(key, in_channels, out_channels):
    hidden = 2 * out_channels
    k1, k2, k3 = jax.random.split(key, 3)

    def glorot(k, fan_in, fan_out):
        scale = jnp.sqrt(6.0 / (fan_in + fan_out))
        return jax.random.uniform(k, (fan_in, fan_out), jnp.float32,
                                  -scale, scale)

    return {
        "w1": glorot(k1, in_channels, hidden),
        "b1": jnp.zeros((1, hidden), jnp.float32),
        "w_mu": glorot(k2, hidden, out_channels),
        "b_mu": jnp.zeros((1, out_channels), jnp.float32),
        "w_logstd": glorot(k3, hidden, out_channels),
        "b_logstd": jnp.zeros((1, out_channels), jnp.float32),
    }


# Pure-JAX f32 reference for correctness checking.
def vgcn_encoder_ref(a_hat, x, p):
    h = jnp.maximum(a_hat @ (x @ p["w1"]) + p["b1"], 0.0)
    mu = a_hat @ (h @ p["w_mu"]) + p["b_mu"]
    ls = a_hat @ (h @ p["w_logstd"]) + p["b_logstd"]
    return mu, ls


if __name__ == "__main__":
    N = 512             # number of nodes (small demo; exercises a 4x4 grid)
    IN_CHANNELS = 16
    OUT_CHANNELS = 16

    key = jax.random.PRNGKey(0)
    k_x, k_p = jax.random.split(key)

    # Node features [N, in_channels].
    x = jax.random.normal(k_x, (N, IN_CHANNELS), jnp.float32)

    # Deterministic ring graph, both directions: edge_index [2, 2N].
    src = jnp.arange(N, dtype=jnp.int32)
    dst = (src + 1) % N
    edge_index = jnp.stack([jnp.concatenate([src, dst]),
                            jnp.concatenate([dst, src])], axis=0)

    a_hat = build_normalized_adjacency(edge_index, N)
    params = init_params(k_p, IN_CHANNELS, OUT_CHANNELS)

    # Small tiles so the 2-D (rows, contraction) grid is actually exercised.
    encoder = jax.jit(functools.partial(vgcn_encoder, tm=128, tk=128))
    mu, logstd = encoder(a_hat, x, params)
    jax.block_until_ready((mu, logstd))

    mu_ref, logstd_ref = vgcn_encoder_ref(a_hat, x, params)
    assert mu.shape == (N, OUT_CHANNELS) and logstd.shape == (N, OUT_CHANNELS)
    # bf16 A / XW / HW operands with f32 accumulation -> ~1e-3 relative error.
    assert jnp.allclose(mu, mu_ref, atol=2e-2, rtol=2e-2), \
        float(jnp.max(jnp.abs(mu - mu_ref)))
    assert jnp.allclose(logstd, logstd_ref, atol=2e-2, rtol=2e-2), \
        float(jnp.max(jnp.abs(logstd - logstd_ref)))

    print("KERNEL_OK")
</pallas_src>

<mosaic_0001>
module attributes {stable_mosaic.version = 11 : i64} {
  func.func @_conv1_project_kernel(%arg0: i32, %arg1: i32, %arg2: memref<128x128xbf16, #tpu.memory_space<vmem>>, %arg3: memref<128x32xbf16, #tpu.memory_space<vmem>>, %arg4: memref<1x32xf32, #tpu.memory_space<vmem>>, %arg5: memref<32x32xf32, #tpu.memory_space<vmem>>, %arg6: memref<128x32xbf16, #tpu.memory_space<vmem>>, %arg7: memref<128x32xf32, #tpu.memory_space<vmem>>) attributes {dimension_semantics = [#tpu.dimension_semantics<parallel>, #tpu.dimension_semantics<arbitrary>], iteration_bounds = array<i64: 4, 4>, scalar_prefetch = 0 : i64, scratch_operands = 1 : i64, tpu.core_type = #tpu.core_type<tc>, window_params = [{transform_indices = @transform_0, window_bounds = array<i64: 128, 128>}, {transform_indices = @transform_1, window_bounds = array<i64: 128, 32>}, {pipeline_mode = #tpu.pipeline_mode<synchronous>, transform_indices = @transform_2, window_bounds = array<i64: 1, 32>}, {pipeline_mode = #tpu.pipeline_mode<synchronous>, transform_indices = @transform_3, window_bounds = array<i64: 32, 32>}, {transform_indices = @transform_4, window_bounds = array<i64: 128, 32>}]} {
    %c0_i32 = arith.constant 0 : i32
    %0 = arith.cmpi eq, %arg1, %c0_i32 : i32
    %1 = arith.extui %0 : i1 to i32
    %c0_i32_0 = arith.constant 0 : i32
    %2 = arith.cmpi ne, %1, %c0_i32_0 : i32
    scf.if %2 {
      %cst_9 = arith.constant 0.000000e+00 : f32
      %12 = vector.broadcast %cst_9 : f32 to vector<128x32xf32>
      %c0_10 = arith.constant 0 : index
      %c0_11 = arith.constant 0 : index
      %13 = vector.load %arg7[%c0_10, %c0_11] : memref<128x32xf32, #tpu.memory_space<vmem>>, vector<128x32xf32>
      tpu.vector_store %arg7[%c0_10, %c0_11], %12 {strides = array<i32>} : memref<128x32xf32, #tpu.memory_space<vmem>>, vector<128x32xf32>,
    } else {
    }
    %c0 = arith.constant 0 : index
    %c0_1 = arith.constant 0 : index
    %3 = vector.load %arg7[%c0, %c0_1] : memref<128x32xf32, #tpu.memory_space<vmem>>, vector<128x32xf32>
    %c0_2 = arith.constant 0 : index
    %c0_3 = arith.constant 0 : index
    %4 = vector.load %arg2[%c0_2, %c0_3] : memref<128x128xbf16, #tpu.memory_space<vmem>>, vector<128x128xbf16>
    %c0_4 = arith.constant 0 : index
    %c0_5 = arith.constant 0 : index
    %5 = vector.load %arg3[%c0_4, %c0_5] : memref<128x32xbf16, #tpu.memory_space<vmem>>, vector<128x32xbf16>
    %cst = arith.constant dense<0.000000e+00> : vector<128x32xf32>
    %6 = tpu.matmul %4, %5, %cst {dimension_numbers = #tpu.dot_dimension_numbers<[1], [0], [0], [1], [0, 0, 1, 1], [], []>} : vector<128x128xbf16>, vector<128x32xbf16>, vector<128x32xf32> -> vector<128x32xf32>
    %7 = arith.addf %3, %6 : vector<128x32xf32>
    %c0_6 = arith.constant 0 : index
    %c0_7 = arith.constant 0 : index
    %8 = vector.load %arg7[%c0_6, %c0_7] : memref<128x32xf32, #tpu.memory_space<vmem>>, vector<128x32xf32>
    tpu.vector_store %arg7[%c0_6, %c0_7], %7 {strides = array<i32>} : memref<128x32xf32, #tpu.memory_space<vmem>>, vector<128x32xf32>,
    %c3_i32 = arith.constant 3 : i32
    %9 = arith.cmpi eq, %arg1, %c3_i32 : i32
    %10 = arith.extui %9 : i1 to i32
    %c0_i32_8 = arith.constant 0 : i32
    %11 = arith.cmpi ne, %10, %c0_i32_8 : i32
    scf.if %11 {
      %c0_9 = arith.constant 0 : index
      %c0_10 = arith.constant 0 : index
      %12 = vector.load %arg7[%c0_9, %c0_10] : memref<128x32xf32, #tpu.memory_space<vmem>>, vector<128x32xf32>
      %c0_11 = arith.constant 0 : index
      %c0_12 = arith.constant 0 : index
      %13 = vector.load %arg4[%c0_11, %c0_12] : memref<1x32xf32, #tpu.memory_space<vmem>>, vector<1x32xf32>
      %14 = vector.broadcast %13 : vector<1x32xf32> to vector<128x32xf32>
      %15 = arith.addf %12, %14 : vector<128x32xf32>
      %cst_13 = arith.constant 0.000000e+00 : f32
      %16 = vector.broadcast %cst_13 : f32 to vector<128x32xf32>
      %17 = arith.maximumf %15, %16 : vector<128x32xf32>
      %c0_14 = arith.constant 0 : index
      %c0_15 = arith.constant 0 : index
      %18 = vector.load %arg5[%c0_14, %c0_15] : memref<32x32xf32, #tpu.memory_space<vmem>>, vector<32x32xf32>
      %cst_16 = arith.constant dense<0.000000e+00> : vector<128x32xf32>
      %19 = tpu.matmul %17, %18, %cst_16 {dimension_numbers = #tpu.dot_dimension_numbers<[1], [0], [0], [1], [0, 0, 1, 1], [], []>} : vector<128x32xf32>, vector<32x32xf32>, vector<128x32xf32> -> vector<128x32xf32>
      %20 = arith.truncf %19 : vector<128x32xf32> to vector<128x32xbf16>
      %c0_17 = arith.constant 0 : index
      %c0_18 = arith.constant 0 : index
      %21 = vector.load %arg6[%c0_17, %c0_18] : memref<128x32xbf16, #tpu.memory_space<vmem>>, vector<128x32xbf16>
      tpu.vector_store %arg6[%c0_17, %c0_18], %20 {strides = array<i32>} : memref<128x32xbf16, #tpu.memory_space<vmem>>, vector<128x32xbf16>,
    } else {
    }
    return
  }
  func.func @transform_0(%arg0: i32, %arg1: i32) -> (i32, i32) {
    %c0_i32 = arith.constant 0 : i32
    return %arg0, %arg1 : i32, i32
  }
  func.func @transform_1(%arg0: i32, %arg1: i32) -> (i32, i32) {
    %c0_i32 = arith.constant 0 : i32
    %c0_i32_0 = arith.constant 0 : i32
    return %arg1, %c0_i32 : i32, i32
  }
  func.func @transform_2(%arg0: i32, %arg1: i32) -> (i32, i32) {
    %c0_i32 = arith.constant 0 : i32
    %c0_i32_0 = arith.constant 0 : i32
    %c0_i32_1 = arith.constant 0 : i32
    return %c0_i32, %c0_i32_0 : i32, i32
  }
  func.func @transform_3(%arg0: i32, %arg1: i32) -> (i32, i32) {
    %c0_i32 = arith.constant 0 : i32
    %c0_i32_0 = arith.constant 0 : i32
    %c0_i32_1 = arith.constant 0 : i32
    return %c0_i32, %c0_i32_0 : i32, i32
  }
  func.func @transform_4(%arg0: i32, %arg1: i32) -> (i32, i32) {
    %c0_i32 = arith.constant 0 : i32
    %c0_i32_0 = arith.constant 0 : i32
    return %arg0, %c0_i32 : i32, i32
  }
}

module attributes {stable_mosaic.version = 11 : i64} {
  func.func @_feature_matmul_kernel(%arg0: i32, %arg1: memref<128x16xf32, #tpu.memory_space<vmem>>, %arg2: memref<16x32xf32, #tpu.memory_space<vmem>>, %arg3: memref<128x32xbf16, #tpu.memory_space<vmem>>) attributes {dimension_semantics = [#tpu.dimension_semantics<parallel>], iteration_bounds = array<i64: 4>, scalar_prefetch = 0 : i64, scratch_operands = 0 : i64, tpu.core_type = #tpu.core_type<tc>, window_params = [{transform_indices = @transform_0, window_bounds = array<i64: 128, 16>}, {pipeline_mode = #tpu.pipeline_mode<synchronous>, transform_indices = @transform_1, window_bounds = array<i64: 16, 32>}, {transform_indices = @transform_2, window_bounds = array<i64: 128, 32>}]} {
    %c0 = arith.constant 0 : index
    %c0_0 = arith.constant 0 : index
    %0 = vector.load %arg1[%c0, %c0_0] : memref<128x16xf32, #tpu.memory_space<vmem>>, vector<128x16xf32>
    %c0_1 = arith.constant 0 : index
    %c0_2 = arith.constant 0 : index
    %1 = vector.load %arg2[%c0_1, %c0_2] : memref<16x32xf32, #tpu.memory_space<vmem>>, vector<16x32xf32>
    %cst = arith.constant dense<0.000000e+00> : vector<128x32xf32>
    %2 = tpu.matmul %0, %1, %cst {dimension_numbers = #tpu.dot_dimension_numbers<[1], [0], [0], [1], [0, 0, 1, 1], [], []>} : vector<128x16xf32>, vector<16x32xf32>, vector<128x32xf32> -> vector<128x32xf32>
    %3 = arith.truncf %2 : vector<128x32xf32> to vector<128x32xbf16>
    %c0_3 = arith.constant 0 : index
    %c0_4 = arith.constant 0 : index
    %4 = vector.load %arg3[%c0_3, %c0_4] : memref<128x32xbf16, #tpu.memory_space<vmem>>, vector<128x32xbf16>
    tpu.vector_store %arg3[%c0_3, %c0_4], %3 {strides = array<i32>} : memref<128x32xbf16, #tpu.memory_space<vmem>>, vector<128x32xbf16>,
    return
  }
  func.func @transform_0(%arg0: i32) -> (i32, i32) {
    %c0_i32 = arith.constant 0 : i32
    %c0_i32_0 = arith.constant 0 : i32
    return %arg0, %c0_i32 : i32, i32
  }
  func.func @transform_1(%arg0: i32) -> (i32, i32) {
    %c0_i32 = arith.constant 0 : i32
    %c0_i32_0 = arith.constant 0 : i32
    %c0_i32_1 = arith.constant 0 : i32
    return %c0_i32, %c0_i32_0 : i32, i32
  }
  func.func @transform_2(%arg0: i32) -> (i32, i32) {
    %c0_i32 = arith.constant 0 : i32
    %c0_i32_0 = arith.constant 0 : i32
    return %arg0, %c0_i32 : i32, i32
  }
}

module attributes {stable_mosaic.version = 11 : i64} {
  func.func @_conv_out_kernel(%arg0: i32, %arg1: i32, %arg2: memref<128x128xbf16, #tpu.memory_space<vmem>>, %arg3: memref<128x32xbf16, #tpu.memory_space<vmem>>, %arg4: memref<1x32xf32, #tpu.memory_space<vmem>>, %arg5: memref<128x32xf32, #tpu.memory_space<vmem>>, %arg6: memref<128x32xf32, #tpu.memory_space<vmem>>) attributes {dimension_semantics = [#tpu.dimension_semantics<parallel>, #tpu.dimension_semantics<arbitrary>], iteration_bounds = array<i64: 4, 4>, scalar_prefetch = 0 : i64, scratch_operands = 1 : i64, tpu.core_type = #tpu.core_type<tc>, window_params = [{transform_indices = @transform_0, window_bounds = array<i64: 128, 128>}, {transform_indices = @transform_1, window_bounds = array<i64: 128, 32>}, {pipeline_mode = #tpu.pipeline_mode<synchronous>, transform_indices = @transform_2, window_bounds = array<i64: 1, 32>}, {transform_indices = @transform_3, window_bounds = array<i64: 128, 32>}]} {
    %c0_i32 = arith.constant 0 : i32
    %0 = arith.cmpi eq, %arg1, %c0_i32 : i32
    %1 = arith.extui %0 : i1 to i32
    %c0_i32_0 = arith.constant 0 : i32
    %2 = arith.cmpi ne, %1, %c0_i32_0 : i32
    scf.if %2 {
      %cst_9 = arith.constant 0.000000e+00 : f32
      %12 = vector.broadcast %cst_9 : f32 to vector<128x32xf32>
      %c0_10 = arith.constant 0 : index
      %c0_11 = arith.constant 0 : index
      %13 = vector.load %arg6[%c0_10, %c0_11] : memref<128x32xf32, #tpu.memory_space<vmem>>, vector<128x32xf32>
      tpu.vector_store %arg6[%c0_10, %c0_11], %12 {strides = array<i32>} : memref<128x32xf32, #tpu.memory_space<vmem>>, vector<128x32xf32>,
    } else {
    }
    %c0 = arith.constant 0 : index
    %c0_1 = arith.constant 0 : index
    %3 = vector.load %arg6[%c0, %c0_1] : memref<128x32xf32, #tpu.memory_space<vmem>>, vector<128x32xf32>
    %c0_2 = arith.constant 0 : index
    %c0_3 = arith.constant 0 : index
    %4 = vector.load %arg2[%c0_2, %c0_3] : memref<128x128xbf16, #tpu.memory_space<vmem>>, vector<128x128xbf16>
    %c0_4 = arith.constant 0 : index
    %c0_5 = arith.constant 0 : index
    %5 = vector.load %arg3[%c0_4, %c0_5] : memref<128x32xbf16, #tpu.memory_space<vmem>>, vector<128x32xbf16>
    %cst = arith.constant dense<0.000000e+00> : vector<128x32xf32>
    %6 = tpu.matmul %4, %5, %cst {dimension_numbers = #tpu.dot_dimension_numbers<[1], [0], [0], [1], [0, 0, 1, 1], [], []>} : vector<128x128xbf16>, vector<128x32xbf16>, vector<128x32xf32> -> vector<128x32xf32>
    %7 = arith.addf %3, %6 : vector<128x32xf32>
    %c0_6 = arith.constant 0 : index
    %c0_7 = arith.constant 0 : index
    %8 = vector.load %arg6[%c0_6, %c0_7] : memref<128x32xf32, #tpu.memory_space<vmem>>, vector<128x32xf32>
    tpu.vector_store %arg6[%c0_6, %c0_7], %7 {strides = array<i32>} : memref<128x32xf32, #tpu.memory_space<vmem>>, vector<128x32xf32>,
    %c3_i32 = arith.constant 3 : i32
    %9 = arith.cmpi eq, %arg1, %c3_i32 : i32
    %10 = arith.extui %9 : i1 to i32
    %c0_i32_8 = arith.constant 0 : i32
    %11 = arith.cmpi ne, %10, %c0_i32_8 : i32
    scf.if %11 {
      %c0_9 = arith.constant 0 : index
      %c0_10 = arith.constant 0 : index
      %12 = vector.load %arg6[%c0_9, %c0_10] : memref<128x32xf32, #tpu.memory_space<vmem>>, vector<128x32xf32>
      %c0_11 = arith.constant 0 : index
      %c0_12 = arith.constant 0 : index
      %13 = vector.load %arg4[%c0_11, %c0_12] : memref<1x32xf32, #tpu.memory_space<vmem>>, vector<1x32xf32>
      %14 = vector.broadcast %13 : vector<1x32xf32> to vector<128x32xf32>
      %15 = arith.addf %12, %14 : vector<128x32xf32>
      %c0_13 = arith.constant 0 : index
      %c0_14 = arith.constant 0 : index
      %16 = vector.load %arg5[%c0_13, %c0_14] : memref<128x32xf32, #tpu.memory_space<vmem>>, vector<128x32xf32>
      tpu.vector_store %arg5[%c0_13, %c0_14], %15 {strides = array<i32>} : memref<128x32xf32, #tpu.memory_space<vmem>>, vector<128x32xf32>,
    } else {
    }
    return
  }
  func.func @transform_0(%arg0: i32, %arg1: i32) -> (i32, i32) {
    %c0_i32 = arith.constant 0 : i32
    return %arg0, %arg1 : i32, i32
  }
  func.func @transform_1(%arg0: i32, %arg1: i32) -> (i32, i32) {
    %c0_i32 = arith.constant 0 : i32
    %c0_i32_0 = arith.constant 0 : i32
    return %arg1, %c0_i32 : i32, i32
  }
  func.func @transform_2(%arg0: i32, %arg1: i32) -> (i32, i32) {
    %c0_i32 = arith.constant 0 : i32
    %c0_i32_0 = arith.constant 0 : i32
    %c0_i32_1 = arith.constant 0 : i32
    return %c0_i32, %c0_i32_0 : i32, i32
  }
  func.func @transform_3(%arg0: i32, %arg1: i32) -> (i32, i32) {
    %c0_i32 = arith.constant 0 : i32
    %c0_i32_0 = arith.constant 0 : i32
    return %arg0, %c0_i32 : i32, i32
  }
}

</mosaic_0001>

<bundles_post_ra>
// kernel: vgcn_encoder.3
= control target key start
LH: loop header
LB: loop body
LE: loop exit
PB: predicated region body
PF: predicated region fallthrough
CT: control target
= control target key end

     0   :  { %s638_s9 = smov 0   ;;  %s715_s0 = inlined_call_operand.vmem [shape: f32[512,16], index: 0, kind: input, shape index: {}]   ;;  %s716_s1 = inlined_call_operand.vmem [shape: f32[16,32], index: 1, kind: input, shape index: {}]   ;;  %s717_s2 = inlined_call_operand.vmem [shape: bf16[512,32], index: 2, kind: output, shape index: {}]  }
   0x1 LB: > { %s496_s10 = sadd.s32 4294967295, %s621_s9   ;;  %p500_p0 = scmp.ge.s32.totalorder %s621_s9, 1  ;;  %s621_s9 = sphi %s638_s9, %s12_s9  }
   0x2   : > { %p113_p1 = scmp.lt.s32.totalorder %s621_s9, 5 }
   0x4   : > { %p114_p2 = pnand %p500_p0, %p113_p1 }
   0x5   : > { %v163_v0 = vld [vmem:[%s716_s1] sm:$0xff] (!%p114_p2)  ;;  %v164_v1 = vld [vmem:[%s716_s1 + $0x8] sm:$0xff] (!%p114_p2)  ;;  %s501_s15 = sshll.u32 (!%p114_p2), %s496_s10, 4  ;;  %vm165_vm0 = vcmask (!%p114_p2), 130048   ;;  %vm423_vm1 = vcmask (!%p114_p2), 257024  }
   0x6   : > { %117 = sbr.rel (%p114_p2) target bundleno = 247 (0xf7), region = 28  ;;  %v601_v2 = vpack.c.bf16 (!%p114_p2), %v164_v1, %v163_v0  ;;  %p136_p3 = scmp.lt.s32.totalorder (!%p114_p2), %s501_s15, 63 }
   0x8   : > { %602 = vmatprep.subr.bf16.mxu0 (!%p114_p2), %v601_v2  ;;  %605 = vmatprep.subr.bf16.mxu1 (!%p114_p2), %v601_v2 }
   0x9   : > { %604 = vmatpush3.bf16.msra.mxu0 (!%p114_p2), %v601_v2  ;;  %606 = vmatpush3.bf16.msra.mxu1 (!%p114_p2), %v601_v2 }
   0xd   : > { %s719_s15 = smov (!%p136_p3, %s501_s15), 63 }
   0xe   : > { %s502_s16 = sshll.u32 %s719_s15, 3  ;;  %s504_s20 = sshll.u32 %s719_s15, 2 }
   0xf   : > { %s139_s19 = scalar_lea.vmem %s715_s0, %s502_s16  ;;  %s678_s23 = scalar_lea.vmem %s717_s2, %s504_s20 }
  0x10   : > { %v147_v3 = vld [vmem:[%s139_s19] sm:$0xff]  ;;  %v148_v5 = vld [vmem:[%s139_s19 + $0x8] sm:$0xff]  ;;  %v149_v7 = vld [vmem:[%s139_s19 + $0x10] sm:$0xff] }
  0x11   : > { %v155_v4 = vld [vmem:[%s139_s19 + $0x40] sm:$0xff]  ;;  %577 = vmatprep.mubr.msk.f32.mxu0 %vm165_vm0, %v147_v3  ;;  %v156_v6 = vld [vmem:[%s139_s19 + $0x48] sm:$0xff]  ;;  %v157_v8 = vld [vmem:[%s139_s19 + $0x50] sm:$0xff] }
  0x12   : > { %589 = vmatprep.mubr.msk.f32.mxu1 %vm165_vm0, %v155_v4  ;;  %578 = vmatmul.mubr.msk.f32.vlgmr.msra.gmra.mrb[0].mxu0 %vm165_vm0, %v148_v5  ;;  %v150_v9 = vld [vmem:[%s139_s19 + $0x18] sm:$0xff]  ;;  %v151_v11 = vld [vmem:[%s139_s19 + $0x20] sm:$0xff]  ;;  %v152_v13 = vld [vmem:[%s139_s19 + $0x28] sm:$0xff] }
  0x13   : > { %590 = vmatmul.mubr.msk.f32.vlgmr.msra.gmra.mrb[0].mxu1 %vm165_vm0, %v156_v6  ;;  %580 = vmatprep.mubr.msk.f32.mxu0 %vm165_vm0, %v149_v7  ;;  %v158_v10 = vld [vmem:[%s139_s19 + $0x58] sm:$0xff]  ;;  %v159_v12 = vld [vmem:[%s139_s19 + $0x60] sm:$0xff]  ;;  %v160_v14 = vld [vmem:[%s139_s19 + $0x68] sm:$0xff] }
  0x14   : > { %592 = vmatprep.mubr.msk.f32.mxu1 %vm165_vm0, %v157_v8  ;;  %v153_v15 = vld [vmem:[%s139_s19 + $0x30] sm:$0xff]  ;;  %v154_v17 = vld [vmem:[%s139_s19 + $0x38] sm:$0xff] }
  0x15   : > { %v161_v16 = vld [vmem:[%s139_s19 + $0x70] sm:$0xff]  ;;  %v162_v18 = vld [vmem:[%s139_s19 + $0x78] sm:$0xff] }
  0x16   : > { %581 = vmatmul.mubr.msk.f32.gmra.mrb[2].mxu0 %vm165_vm0, %v150_v9 }
  0x17   : > { %593 = vmatmul.mubr.msk.f32.gmra.mrb[2].mxu1 %vm165_vm0, %v158_v10  ;;  %583 = vmatprep.mubr.msk.f32.mxu0 %vm165_vm0, %v151_v11 }
  0x18   : > { %595 = vmatprep.mubr.msk.f32.mxu1 %vm165_vm0, %v159_v12 }
  0x1a   : > { %584 = vmatmul.mubr.msk.f32.gmra.mrb[4].mxu0 %vm165_vm0, %v152_v13 }
  0x1b   : > { %596 = vmatmul.mubr.msk.f32.gmra.mrb[4].mxu1 %vm165_vm0, %v160_v14  ;;  %586 = vmatprep.mubr.msk.f32.mxu0 %vm165_vm0, %v153_v15 }
  0x1c   : > { %598 = vmatprep.mubr.msk.f32.mxu1 %vm165_vm0, %v161_v16 }
  0x1e   : > { %587 = vmatmul.mubr.msk.f32.gmra.mrb[6].mxu0 %vm165_vm0, %v154_v17 }
  0x1f   : > { %599 = vmatmul.mubr.msk.f32.gmra.mrb[6].mxu1 %vm165_vm0, %v162_v18 }
  0xe5   : > { %v579_v19 = vpop.f32.mrb[0].mxu0 }
  0xe6   : > { %v591_v20 = vpop.f32.mrb[0].mxu1  ;;  %v540_v21 = vpack.c.bf16 %v579_v19, %v579_v19  ;;  %v280_v23 = vpop.f32.mrb[1].mxu0 }
  0xe7   : > { %v548_v22 = vpack.c.bf16 %v591_v20, %v591_v20  ;;  %v320_v24 = vpop.f32.mrb[1].mxu1  ;;  %v539_v25 = vpack.c.bf16 %v280_v23, %v280_v23 }
  0xe8   : > { %v547_v26 = vpack.c.bf16 %v320_v24, %v320_v24  ;;  %425 = vst.msk [vmem:[%s678_s23 + $0x4] sm:$0xf] %vm423_vm1, %v540_v21 }
  0xe9   : > { %433 = vst.msk [vmem:[%s678_s23 + $0x24] sm:$0xf] %vm423_vm1, %v548_v22  ;;  %424 = vst.msk [vmem:[%s678_s23] sm:$0xf] %vm423_vm1, %v539_v25  ;;  %v582_v27 = vpop.f32.mrb[2].mxu0 }
  0xea   : > { %432 = vst.msk [vmem:[%s678_s23 + $0x20] sm:$0xf] %vm423_vm1, %v547_v26  ;;  %v594_v28 = vpop.f32.mrb[2].mxu1  ;;  %v542_v29 = vpack.c.bf16 %v582_v27, %v582_v27  ;;  %v290_v31 = vpop.f32.mrb[3].mxu0 }
  0xeb   : > { %v550_v30 = vpack.c.bf16 %v594_v28, %v594_v28  ;;  %v330_v32 = vpop.f32.mrb[3].mxu1  ;;  %v541_v33 = vpack.c.bf16 %v290_v31, %v290_v31 }
  0xec   : > { %v549_v34 = vpack.c.bf16 %v330_v32, %v330_v32  ;;  %427 = vst.msk [vmem:[%s678_s23 + $0xc] sm:$0xf] %vm423_vm1, %v542_v29 }
  0xed   : > { %435 = vst.msk [vmem:[%s678_s23 + $0x2c] sm:$0xf] %vm423_vm1, %v550_v30  ;;  %426 = vst.msk [vmem:[%s678_s23 + $0x8] sm:$0xf] %vm423_vm1, %v541_v33  ;;  %v585_v35 = vpop.f32.mrb[4].mxu0 }
  0xee   : > { %434 = vst.msk [vmem:[%s678_s23 + $0x28] sm:$0xf] %vm423_vm1, %v549_v34  ;;  %v597_v36 = vpop.f32.mrb[4].mxu1  ;;  %v544_v37 = vpack.c.bf16 %v585_v35, %v585_v35  ;;  %v300_v39 = vpop.f32.mrb[5].mxu0 }
  0xef   : > { %v552_v38 = vpack.c.bf16 %v597_v36, %v597_v36  ;;  %v340_v40 = vpop.f32.mrb[5].mxu1  ;;  %v543_v41 = vpack.c.bf16 %v300_v39, %v300_v39 }
  0xf0   : > { %v551_v42 = vpack.c.bf16 %v340_v40, %v340_v40  ;;  %429 = vst.msk [vmem:[%s678_s23 + $0x14] sm:$0xf] %vm423_vm1, %v544_v37 }
  0xf1   : > { %437 = vst.msk [vmem:[%s678_s23 + $0x34] sm:$0xf] %vm423_vm1, %v552_v38  ;;  %428 = vst.msk [vmem:[%s678_s23 + $0x10] sm:$0xf] %vm423_vm1, %v543_v41  ;;  %v588_v43 = vpop.f32.mrb[6].mxu0 }
  0xf2   : > { %436 = vst.msk [vmem:[%s678_s23 + $0x30] sm:$0xf] %vm423_vm1, %v551_v42  ;;  %v600_v44 = vpop.f32.mrb[6].mxu1  ;;  %v546_v45 = vpack.c.bf16 %v588_v43, %v588_v43  ;;  %v310_v47 = vpop.f32.mrb[7].mxu0 }
  0xf3   : > { %v554_v46 = vpack.c.bf16 %v600_v44, %v600_v44  ;;  %v350_v48 = vpop.f32.mrb[7].mxu1  ;;  %v545_v49 = vpack.c.bf16 %v310_v47, %v310_v47 }
  0xf4   : > { %v553_v50 = vpack.c.bf16 %v350_v48, %v350_v48  ;;  %431 = vst.msk [vmem:[%s678_s23 + $0x1c] sm:$0xf] %vm423_vm1, %v546_v45 }
  0xf5   : > { %439 = vst.msk [vmem:[%s678_s23 + $0x3c] sm:$0xf] %vm423_vm1, %v554_v46  ;;  %430 = vst.msk [vmem:[%s678_s23 + $0x18] sm:$0xf] %vm423_vm1, %v545_v49 }
  0xf6   : > { %438 = vst.msk [vmem:[%s678_s23 + $0x38] sm:$0xf] %vm423_vm1, %v553_v50 }
  0xf7 PF: > { %s12_s9 = sadd.s32 1, %s621_s9  }
  0xf8   : > { %p9_p4 = scmp.ge.s32.totalorder %s12_s9, 6  }
  0xfa   :  { %11 = sbr.rel (!%p9_p4) target bundleno = 1 (0x1), region = 58 }

// kernel: vgcn_encoder.5
= control target key start
LH: loop header
LB: loop body
LE: loop exit
PB: predicated region body
PF: predicated region fallthrough
CT: control target
= control target key end

     0   :  { %s1006_s12 = smov 0   ;;  %s1008_s13 = smov 0   ;;  %s1207_s0 = inlined_call_operand.vmem [shape: bf16[512,512], index: 0, kind: input, shape index: {}]   ;;  %s1208_s1 = inlined_call_operand.vmem [shape: bf16[512,32], index: 1, kind: input, shape index: {}]   ;;  %s1209_s2 = inlined_call_operand.vmem [shape: f32[1,32], index: 2, kind: input, shape index: {}]   ;;  %s1210_s3 = inlined_call_operand.vmem [shape: f32[512,32], index: 3, kind: output, shape index: {}]  }
   0x1   :  { %s1010_s14 = smov 0   ;;  %s1012_s15 = smov 0  }
   0x2   :  { %s1014_s16 = smov 0   ;;  %s1016_s17 = smov 0  }
   0x3   :  { %s1018_s18 = smov 0  }
   0x4 LB: > { %s22_s19 = sadd.s32 1, %s975_s16  ;;  %s25_s20 = sadd.s32 1, %s979_s17  ;;  %s983_s18 = sphi %s1018_s18, %s13_s18   ;;  %s979_s17 = sphi %s1016_s17, %s1216_s17   ;;  %s975_s16 = sphi %s1014_s16, %s1215_s16   ;;  %s971_s15 = sphi %s1012_s15, %s1214_s15   ;;  %s967_s14 = sphi %s1010_s14, %s1213_s14   ;;  %s963_s13 = sphi %s1008_s13, %s1212_s13   ;;  %s959_s12 = sphi %s1006_s12, %s1211_s12  }
   0x5   : > { %p23_p0 = scmp.ge.s32.totalorder %s22_s19, 4  ;;  %p41_p1 = scmp.ne.s32.totalorder %s963_s13, %s959_s12 }
   0x6   : > { %p42_p2 = scmp.eq.s32.totalorder %s983_s18, 0  ;;  %s34_s24 = sadd.s32 1, %s963_s13 }
   0x7   : > { %s1218_s19 = smov (%p23_p0, %s22_s19), 0  ;;  %s1220_s20 = smov (!%p23_p0, %s25_s20), %s979_s17 }
   0x8   : > { %p43_p3 = por %p42_p2, %p41_p1  ;;  %p27_p4 = scmp.ge.s32.totalorder %s1220_s20, 4 }
   0x9   : > { %s30_s21 = ssub.s32 %s975_s16, %s1218_s19  ;;  %p759_p6 = scmp.ge.s32.totalorder %s983_s18, 16 }
   0xa   : > { %s1222_s20 = smov (%p27_p4, %s1220_s20), 0 }
   0xb   : > { %s29_s22 = ssub.s32 %s979_s17, %s1222_s20  ;;  %143 = sbr.rel (%p759_p6) target bundleno = 35 (0x23), region = 20 }
   0xc   : > { %s31_s23 = sor.u32 %s30_s21, %s29_s22 }
   0xd   : > { %p32_p5 = scmp.eq.s32.totalorder %s31_s23, 0 }
   0xf   : > { %s1057_s25 = scalar_select %p32_p5, %s963_s13, %s34_s24  }
  0x12   : > { %146 = sbr.rel (!%p43_p3) target bundleno = 35 (0x23), region = 24  ;;  %s148_s26 = sand.u32 (%p43_p3), 1, %s963_s13  }
  0x13   : > { %s791_s27 = sshll.u32 (%p43_p3), %s979_s17, 6  ;;  %s760_s28 = sshll.u32 (%p43_p3), %s148_s26, 6 }
  0x14   : > { %s153_s29 = sadd.s32 (%p43_p3), %s975_s16, %s791_s27  ;;  %s150_s7 = scalar_lea.vmem (%p43_p3), [#allocation3], %s760_s28 }
  0x15   : > { %s763_s30 = sshll.u32 (%p43_p3), %s153_s29, 2 }
  0x16   : > { %s1066_s6 = scalar_lea.vmem (%p43_p3), %s1207_s0, %s763_s30 }
  0x17   : > { %v171_v0 = vld [vmem:[%s1066_s6] sm:$0xf] (%p43_p3)  ;;  %v173_v1 = vld [vmem:[%s1066_s6 + $0x10] sm:$0xf] (%p43_p3) }
  0x18   : > { %v175_v2 = vld [vmem:[%s1066_s6 + $0x20] sm:$0xf] (%p43_p3)  ;;  %172 = vst [vmem:[%s150_s7] sm:$0xf] (%p43_p3), %v171_v0  ;;  %174 = vst [vmem:[%s150_s7 + $0x4] sm:$0xf] (%p43_p3), %v173_v1 }
  0x19   : > { %176 = vst [vmem:[%s150_s7 + $0x8] sm:$0xf] %v175_v2  ;;  %v177_v3 = vld [vmem:[%s1066_s6 + $0x30] sm:$0xf]  ;;  %v179_v4 = vld [vmem:[%s1066_s6 + $0x40] sm:$0xf] }
  0x1a   : > { %v181_v5 = vld [vmem:[%s1066_s6 + $0x50] sm:$0xf]  ;;  %178 = vst [vmem:[%s150_s7 + $0xc] sm:$0xf] %v177_v3  ;;  %180 = vst [vmem:[%s150_s7 + $0x10] sm:$0xf] %v179_v4 }
  0x1b   : > { %182 = vst [vmem:[%s150_s7 + $0x14] sm:$0xf] %v181_v5  ;;  %v183_v6 = vld [vmem:[%s1066_s6 + $0x60] sm:$0xf]  ;;  %v185_v7 = vld [vmem:[%s1066_s6 + $0x70] sm:$0xf] }
  0x1c   : > { %v187_v8 = vld [vmem:[%s1066_s6 + $0x80] sm:$0xf]  ;;  %184 = vst [vmem:[%s150_s7 + $0x18] sm:$0xf] %v183_v6  ;;  %186 = vst [vmem:[%s150_s7 + $0x1c] sm:$0xf] %v185_v7 }
  0x1d   : > { %188 = vst [vmem:[%s150_s7 + $0x20] sm:$0xf] %v187_v8  ;;  %v189_v9 = vld [vmem:[%s1066_s6 + $0x90] sm:$0xf]  ;;  %v191_v10 = vld [vmem:[%s1066_s6 + $0xa0] sm:$0xf] }
  0x1e   : > { %v193_v11 = vld [vmem:[%s1066_s6 + $0xb0] sm:$0xf]  ;;  %190 = vst [vmem:[%s150_s7 + $0x24] sm:$0xf] %v189_v9  ;;  %192 = vst [vmem:[%s150_s7 + $0x28] sm:$0xf] %v191_v10 }
  0x1f   : > { %194 = vst [vmem:[%s150_s7 + $0x2c] sm:$0xf] %v193_v11  ;;  %v195_v12 = vld [vmem:[%s1066_s6 + $0xc0] sm:$0xf]  ;;  %v197_v13 = vld [vmem:[%s1066_s6 + $0xd0] sm:$0xf] }
  0x20   : > { %v199_v14 = vld [vmem:[%s1066_s6 + $0xe0] sm:$0xf]  ;;  %196 = vst [vmem:[%s150_s7 + $0x30] sm:$0xf] %v195_v12  ;;  %198 = vst [vmem:[%s150_s7 + $0x34] sm:$0xf] %v197_v13 }
  0x21   : > { %200 = vst [vmem:[%s150_s7 + $0x38] sm:$0xf] %v199_v14  ;;  %v201_v15 = vld [vmem:[%s1066_s6 + $0xf0] sm:$0xf] }
  0x22   : > { %202 = vst [vmem:[%s150_s7 + $0x3c] sm:$0xf] %v201_v15 }
  0x23 PF: > { %p764_p7 = scmp.ge.s32.totalorder %s983_s18, 1  ;;  %p265_p8 = scmp.lt.s32.totalorder %s983_s18, 17 }
  0x25   : > { %p266_p9 = pnand %p764_p7, %p265_p8 }
  0x26   : > { %s272_s8 = sand.u32 (!%p266_p9), 1, %s959_s12   ;;  %s766_s9 = sshll.u32 (!%p266_p9), %s967_s14, 4 }
  0x27   : > { %269 = sbr.rel (%p266_p9) target bundleno = 326 (0x146), region = 69  ;;  %s765_s10 = sshll.u32 (!%p266_p9), %s272_s8, 6 }
  0x28   : > { %p302_p10 = scmp.lt.s32.totalorder (!%p266_p9), %s766_s9, 63  ;;  %s768_s11 = sshll.u32 (!%p266_p9), %s971_s15, 4 }
  0x29   : > { %p308_p11 = scmp.lt.s32.totalorder (!%p266_p9), %s768_s11, 63  ;;  %s1099_s12 = scalar_lea.vmem (!%p266_p9), [#allocation3], %s765_s10 }
  0x2a   : > { %p770_p12 = scmp.ne.s32.totalorder (!%p266_p9), %s967_s14, 0 }
  0x2e   : > { %s1224_s9 = smov (!%p302_p10, %s766_s9), 63  ;;  %s1226_s11 = smov (!%p308_p11, %s768_s11), 63 }
  0x2f   : > { %s767_s21 = sshll.u32 %s1224_s9, 2  ;;  %s769_s26 = sshll.u32 %s1226_s11, 3  ;;  %vm318_vm0 = vcmask (!%p770_p12), 261120   ;;  %v985_v16 = vmov (!%p770_p12), 0.0  }
  0x30   : > { %s1092_s24 = scalar_lea.vmem %s1208_s1, %s767_s21  ;;  %s1097_s29 = scalar_lea.vmem %s1210_s3, %s769_s26  ;;  %319 = vst.msk [vmem:[#allocation2] sm:$0xff] (!%p770_p12), %vm318_vm0, %v985_v16  ;;  %320 = vst.msk [vmem:[#allocation2 + $0x8] sm:$0xff] (!%p770_p12), %vm318_vm0, %v985_v16 }
  0x31   : > { %317 = sbr.rel (%p770_p12) target bundleno = 56 (0x38), region = 77  ;;  %321 = vst.msk [vmem:[#allocation2 + $0x10] sm:$0xff] (!%p770_p12), %vm318_vm0, %v985_v16  ;;  %322 = vst.msk [vmem:[#allocation2 + $0x18] sm:$0xff] (!%p770_p12), %vm318_vm0, %v985_v16 }
  0x32   : > { %323 = vst.msk [vmem:[#allocation2 + $0x20] sm:$0xff] (!%p770_p12), %vm318_vm0, %v985_v16  ;;  %324 = vst.msk [vmem:[#allocation2 + $0x28] sm:$0xff] (!%p770_p12), %vm318_vm0, %v985_v16 }
  0x33   : > { %325 = vst.msk [vmem:[#allocation2 + $0x30] sm:$0xff] (!%p770_p12), %vm318_vm0, %v985_v16  ;;  %326 = vst.msk [vmem:[#allocation2 + $0x38] sm:$0xff] (!%p770_p12), %vm318_vm0, %v985_v16 }
  0x34   : > { %327 = vst.msk [vmem:[#allocation2 + $0x40] sm:$0xff] (!%p770_p12), %vm318_vm0, %v985_v16  ;;  %328 = vst.msk [vmem:[#allocation2 + $0x48] sm:$0xff] (!%p770_p12), %vm318_vm0, %v985_v16 }
  0x35   : > { %329 = vst.msk [vmem:[#allocation2 + $0x50] sm:$0xff] (!%p770_p12), %vm318_vm0, %v985_v16  ;;  %330 = vst.msk [vmem:[#allocation2 + $0x58] sm:$0xff] (!%p770_p12), %vm318_vm0, %v985_v16 }
  0x36   : > { %331 = vst.msk [vmem:[#allocation2 + $0x60] sm:$0xff] (!%p770_p12), %vm318_vm0, %v985_v16  ;;  %332 = vst.msk [vmem:[#allocation2 + $0x68] sm:$0xff] (!%p770_p12), %vm318_vm0, %v985_v16 }
  0x37   : > { %333 = vst.msk [vmem:[#allocation2 + $0x70] sm:$0xff] (!%p770_p12), %vm318_vm0, %v985_v16  ;;  %334 = vst.msk [vmem:[#allocation2 + $0x78] sm:$0xff] (!%p770_p12), %vm318_vm0, %v985_v16 }
  0x38 PF: > { %v913_v17 = vld [vmem:[%s1092_s24] sm:$0xff]   ;;  %v914_v18 = vld [vmem:[%s1092_s24 + $0x8] sm:$0xff]   ;;  %v915_v19 = vld [vmem:[%s1092_s24 + $0x10] sm:$0xff]   ;;  %vm592_vm1 = vcmask 261120   ;;  %p787_p13 = scmp.ne.s32.totalorder %s967_s14, 3 }
  0x39   : > { %808 = vmatprep.subr.bf16.mxu0 %v913_v17  ;;  %840 = vmatprep.subr.bf16.mxu1 %v913_v17  ;;  %v916_v20 = vld [vmem:[%s1092_s24 + $0x18] sm:$0xff]   ;;  %v921_v21 = vld [vmem:[%s1099_s12] sm:$0xff]   ;;  %v918_v24 = vld [vmem:[%s1092_s24 + $0x28] sm:$0xff]  }
  0x3a   : > { %809 = vmatpush3.bf16.msra.mxu0 %v913_v17  ;;  %848 = vmatpush3.bf16.msra.mxu1 %v913_v17  ;;  %v922_v22 = vld [vmem:[%s1099_s12 + $0x20] sm:$0xff]   ;;  %v919_v25 = vld [vmem:[%s1092_s24 + $0x30] sm:$0xff]   ;;  %v920_v26 = vld [vmem:[%s1092_s24 + $0x38] sm:$0xff]  }
  0x3b   : > { %810 = vmatprep.subr.bf16.mxu0 %v914_v18  ;;  %841 = vmatprep.subr.bf16.mxu1 %v914_v18  ;;  %v917_v23 = vld [vmem:[%s1092_s24 + $0x20] sm:$0xff]   ;;  %v923_v27 = vld [vmem:[%s1099_s12 + $0x8] sm:$0xff]   ;;  %v925_v29 = vld [vmem:[%s1099_s12 + $0x10] sm:$0xff]  }
  0x3c   : > { %824 = vmatprep.mubr.bf16.mxu0 %v921_v21  ;;  %832 = vmatprep.mubr.bf16.mxu1 %v922_v22  ;;  %v924_v28 = vld [vmem:[%s1099_s12 + $0x28] sm:$0xff]   ;;  %v926_v30 = vld [vmem:[%s1099_s12 + $0x30] sm:$0xff]   ;;  %v927_v31 = vld [vmem:[%s1099_s12 + $0x18] sm:$0xff]  }
  0x3d   : > { %v928_v32 = vld [vmem:[%s1099_s12 + $0x38] sm:$0xff]   ;;  %v337_v33 = vld [vmem:[#allocation2 + $0x10] sm:$0xff]  ;;  %v335_v35 = vld [vmem:[#allocation2] sm:$0xff] }
  0x3e   : > { %811 = vmatpush3.bf16.msra.mxu0 %v914_v18  ;;  %849 = vmatpush3.bf16.msra.mxu1 %v914_v18  ;;  %v345_v34 = vld [vmem:[#allocation2 + $0x50] sm:$0xff]  ;;  %v343_v36 = vld [vmem:[#allocation2 + $0x40] sm:$0xff]  ;;  %v338_v39 = vld [vmem:[#allocation2 + $0x18] sm:$0xff] }
  0x3f   : > { %812 = vmatprep.subr.bf16.mxu0 %v915_v19  ;;  %842 = vmatprep.subr.bf16.mxu1 %v915_v19  ;;  %v346_v40 = vld [vmem:[#allocation2 + $0x58] sm:$0xff]  ;;  %v336_v45 = vld [vmem:[#allocation2 + $0x8] sm:$0xff]  ;;  %v341_v57 = vld [vmem:[#allocation2 + $0x30] sm:$0xff] }
  0x40   : > { %v344_v46 = vld [vmem:[#allocation2 + $0x48] sm:$0xff]  ;;  %v349_v58 = vld [vmem:[#allocation2 + $0x70] sm:$0xff]  ;;  %v339_v59 = vld [vmem:[#allocation2 + $0x20] sm:$0xff] }
  0x41   : > { %v347_v60 = vld [vmem:[#allocation2 + $0x60] sm:$0xff]  ;;  %v342_v63 = vld [vmem:[#allocation2 + $0x38] sm:$0xff]  ;;  %v340_v5 = vld [vmem:[#allocation2 + $0x28] sm:$0xff] }
  0x42   : > { %813 = vmatpush3.bf16.msra.mxu0 %v915_v19  ;;  %850 = vmatpush3.bf16.msra.mxu1 %v915_v19  ;;  %v350_v0 = vld [vmem:[#allocation2 + $0x78] sm:$0xff]  ;;  %v348_v6 = vld [vmem:[#allocation2 + $0x68] sm:$0xff]  ;;  %v788_v18 = vld [vmem:[%s1209_s2] ss:$0 sm:$0xff] (!%p787_p13) }
  0x43   : > { %814 = vmatprep.subr.bf16.mxu0 %v916_v20  ;;  %843 = vmatprep.subr.bf16.mxu1 %v916_v20 }
  0x46   : > { %815 = vmatpush3.bf16.msra.mxu0 %v916_v20  ;;  %851 = vmatpush3.bf16.msra.mxu1 %v916_v20 }
  0x47   : > { %816 = vmatprep.subr.bf16.mxu0 %v917_v23  ;;  %844 = vmatprep.subr.bf16.mxu1 %v917_v23 }
  0x4a   : > { %817 = vmatpush3.bf16.msra.mxu0 %v917_v23  ;;  %852 = vmatpush3.bf16.msra.mxu1 %v917_v23 }
  0x4b   : > { %818 = vmatprep.subr.bf16.mxu0 %v918_v24  ;;  %845 = vmatprep.subr.bf16.mxu1 %v918_v24 }
  0x4e   : > { %819 = vmatpush3.bf16.msra.mxu0 %v918_v24  ;;  %853 = vmatpush3.bf16.msra.mxu1 %v918_v24 }
  0x4f   : > { %820 = vmatprep.subr.bf16.mxu0 %v919_v25  ;;  %846 = vmatprep.subr.bf16.mxu1 %v919_v25 }
  0x52   : > { %821 = vmatpush3.bf16.msra.mxu0 %v919_v25  ;;  %854 = vmatpush3.bf16.msra.mxu1 %v919_v25 }
  0x53   : > { %822 = vmatprep.subr.bf16.mxu0 %v920_v26  ;;  %847 = vmatprep.subr.bf16.mxu1 %v920_v26 }
  0x56   : > { %823 = vmatpush3.bf16.msra.mxu0 %v920_v26  ;;  %855 = vmatpush3.bf16.msra.mxu1 %v920_v26 }
  0x59   : > { %825 = vmatmul.mubr.bf16.vlgmr.msra.gmra.mrb[0].mxu0 %v923_v27  ;;  %833 = vmatmul.mubr.bf16.vlgmr.msra.gmra.mrb[0].mxu1 %v924_v28 }
  0x5a   : > { %828 = vmatprep.mubr.bf16.mxu0 %v925_v29  ;;  %836 = vmatprep.mubr.bf16.mxu1 %v926_v30 }
  0x61   : > { %829 = vmatmul.mubr.bf16.gmra.mrb[4].mxu0 %v927_v31  ;;  %837 = vmatmul.mubr.bf16.gmra.mrb[4].mxu1 %v928_v32 }
 0x12c   : > { %v826_v37 = vpop.f32.mrb[0].mxu0  ;;  %v834_v38 = vpop.f32.mrb[0].mxu1 }
 0x12d   : > { %v578_v41 = vadd.f32 %v826_v37, %v337_v33  ;;  %v586_v42 = vadd.f32 %v834_v38, %v345_v34  ;;  %v513_v43 = vpop.f32.mrb[1].mxu0  ;;  %v545_v44 = vpop.f32.mrb[1].mxu1 }
 0x12e   : > { %v576_v47 = vadd.f32 %v513_v43, %v335_v35  ;;  %v584_v48 = vadd.f32 %v545_v44, %v343_v36  ;;  %v827_v49 = vpop.f32.mrb[2].mxu0  ;;  %v835_v50 = vpop.f32.mrb[2].mxu1 }
 0x12f   : > { %595 = vst.msk [vmem:[#allocation2 + $0x10] sm:$0xff] %vm592_vm1, %v578_v41  ;;  %603 = vst.msk [vmem:[#allocation2 + $0x50] sm:$0xff] %vm592_vm1, %v586_v42  ;;  %v579_v51 = vadd.f32 %v827_v49, %v338_v39  ;;  %v587_v52 = vadd.f32 %v835_v50, %v346_v40  ;;  %v516_v53 = vpop.f32.mrb[3].mxu0  ;;  %v548_v54 = vpop.f32.mrb[3].mxu1 }
 0x130   : > { %593 = vst.msk [vmem:[#allocation2] sm:$0xff] %vm592_vm1, %v576_v47  ;;  %601 = vst.msk [vmem:[#allocation2 + $0x40] sm:$0xff] %vm592_vm1, %v584_v48  ;;  %v577_v55 = vadd.f32 %v516_v53, %v336_v45  ;;  %v585_v56 = vadd.f32 %v548_v54, %v344_v46 }
 0x131   : > { %596 = vst.msk [vmem:[#allocation2 + $0x18] sm:$0xff] %vm592_vm1, %v579_v51  ;;  %604 = vst.msk [vmem:[#allocation2 + $0x58] sm:$0xff] %vm592_vm1, %v587_v52 }
 0x132   : > { %594 = vst.msk [vmem:[#allocation2 + $0x8] sm:$0xff] %vm592_vm1, %v577_v55  ;;  %602 = vst.msk [vmem:[#allocation2 + $0x48] sm:$0xff] %vm592_vm1, %v585_v56 }
 0x134   : > { %v830_v61 = vpop.f32.mrb[4].mxu0  ;;  %v838_v62 = vpop.f32.mrb[4].mxu1  ;;  %612 = sbr.rel (%p787_p13) target bundleno = 326 (0x146), region = 81 }
 0x135   : > { %v582_v1 = vadd.f32 %v830_v61, %v341_v57  ;;  %v590_v2 = vadd.f32 %v838_v62, %v349_v58  ;;  %v529_v3 = vpop.f32.mrb[5].mxu0  ;;  %v561_v4 = vpop.f32.mrb[5].mxu1 }
 0x136   : > { %v580_v7 = vadd.f32 %v529_v3, %v339_v59  ;;  %v588_v8 = vadd.f32 %v561_v4, %v347_v60  ;;  %v831_v9 = vpop.f32.mrb[6].mxu0  ;;  %v839_v10 = vpop.f32.mrb[6].mxu1  ;;  %v615_v22 = vld [vmem:[#allocation2 + $0x10] sm:$0xff] (!%p787_p13) }
 0x137   : > { %599 = vst.msk [vmem:[#allocation2 + $0x30] sm:$0xff] %vm592_vm1, %v582_v1  ;;  %607 = vst.msk [vmem:[#allocation2 + $0x70] sm:$0xff] %vm592_vm1, %v590_v2  ;;  %v583_v11 = vadd.f32 %v831_v9, %v342_v63  ;;  %v591_v12 = vadd.f32 %v839_v10, %v350_v0  ;;  %v532_v13 = vpop.f32.mrb[7].mxu0  ;;  %v564_v14 = vpop.f32.mrb[7].mxu1  ;;  %v613_v17 = vld [vmem:[#allocation2] sm:$0xff] (!%p787_p13)  ;;  %v638_v25 = vadd.f32 (!%p787_p13), %v788_v18, %v615_v22  ;;  %v623_v36 = vld [vmem:[#allocation2 + $0x50] sm:$0xff] (!%p787_p13) }
 0x138   : > { %597 = vst.msk [vmem:[#allocation2 + $0x20] sm:$0xff] %vm592_vm1, %v580_v7  ;;  %605 = vst.msk [vmem:[#allocation2 + $0x60] sm:$0xff] %vm592_vm1, %v588_v8  ;;  %v581_v15 = vadd.f32 %v532_v13, %v340_v5  ;;  %v589_v16 = vadd.f32 %v564_v14, %v348_v6  ;;  %v636_v20 = vadd.f32 (!%p787_p13), %v788_v18, %v613_v17  ;;  %v616_v23 = vld [vmem:[#allocation2 + $0x18] sm:$0xff] (!%p787_p13)  ;;  %v621_v34 = vld [vmem:[#allocation2 + $0x40] sm:$0xff] (!%p787_p13) }
 0x139   : > { %600 = vst.msk [vmem:[#allocation2 + $0x38] sm:$0xff] %vm592_vm1, %v583_v11  ;;  %608 = vst.msk [vmem:[#allocation2 + $0x78] sm:$0xff] %vm592_vm1, %v591_v12  ;;  %v614_v19 = vld [vmem:[#allocation2 + $0x8] sm:$0xff] (!%p787_p13)  ;;  %v639_v26 = vadd.f32 (!%p787_p13), %v788_v18, %v616_v23  ;;  %v644_v37 = vadd.f32 (!%p787_p13), %v788_v18, %v621_v34  ;;  %v646_v39 = vadd.f32 (!%p787_p13), %v788_v18, %v623_v36  ;;  %v624_v40 = vld [vmem:[#allocation2 + $0x58] sm:$0xff] (!%p787_p13) }
 0x13a   : > { %598 = vst.msk [vmem:[#allocation2 + $0x28] sm:$0xff] %vm592_vm1, %v581_v15  ;;  %606 = vst.msk [vmem:[#allocation2 + $0x68] sm:$0xff] %vm592_vm1, %v589_v16  ;;  %v637_v21 = vadd.f32 (!%p787_p13), %v788_v18, %v614_v19  ;;  %v622_v35 = vld [vmem:[#allocation2 + $0x48] sm:$0xff] (!%p787_p13)  ;;  %v647_v43 = vadd.f32 (!%p787_p13), %v788_v18, %v624_v40 }
 0x13b   : > { %652 = vst.msk [vmem:[%s1097_s29] sm:$0xff] %vm592_vm1, %v636_v20  ;;  %654 = vst.msk [vmem:[%s1097_s29 + $0x10] sm:$0xff] %vm592_vm1, %v638_v25  ;;  %v645_v38 = vadd.f32 %v788_v18, %v622_v35 }
 0x13c   : > { %653 = vst.msk [vmem:[%s1097_s29 + $0x8] sm:$0xff] %vm592_vm1, %v637_v21  ;;  %655 = vst.msk [vmem:[%s1097_s29 + $0x18] sm:$0xff] %vm592_vm1, %v639_v26 }
 0x13d   : > { %660 = vst.msk [vmem:[%s1097_s29 + $0x40] sm:$0xff] %vm592_vm1, %v644_v37  ;;  %661 = vst.msk [vmem:[%s1097_s29 + $0x48] sm:$0xff] %vm592_vm1, %v645_v38 }
 0x13e   : > { %v619_v29 = vld [vmem:[#allocation2 + $0x30] sm:$0xff]  ;;  %662 = vst.msk [vmem:[%s1097_s29 + $0x50] sm:$0xff] %vm592_vm1, %v646_v39  ;;  %663 = vst.msk [vmem:[%s1097_s29 + $0x58] sm:$0xff] %vm592_vm1, %v647_v43 }
 0x13f   : > { %v617_v24 = vld [vmem:[#allocation2 + $0x20] sm:$0xff]  ;;  %v642_v32 = vadd.f32 %v788_v18, %v619_v29  ;;  %v627_v46 = vld [vmem:[#allocation2 + $0x70] sm:$0xff] }
 0x140   : > { %v640_v27 = vadd.f32 %v788_v18, %v617_v24  ;;  %v620_v30 = vld [vmem:[#allocation2 + $0x38] sm:$0xff]  ;;  %v625_v41 = vld [vmem:[#allocation2 + $0x60] sm:$0xff]  ;;  %v650_v48 = vadd.f32 %v788_v18, %v627_v46 }
 0x141   : > { %v618_v28 = vld [vmem:[#allocation2 + $0x28] sm:$0xff]  ;;  %v643_v33 = vadd.f32 %v788_v18, %v620_v30  ;;  %658 = vst.msk [vmem:[%s1097_s29 + $0x30] sm:$0xff] %vm592_vm1, %v642_v32  ;;  %v648_v44 = vadd.f32 %v788_v18, %v625_v41  ;;  %v628_v47 = vld [vmem:[#allocation2 + $0x78] sm:$0xff] }
 0x142   : > { %v641_v31 = vadd.f32 %v788_v18, %v618_v28  ;;  %656 = vst.msk [vmem:[%s1097_s29 + $0x20] sm:$0xff] %vm592_vm1, %v640_v27  ;;  %v626_v42 = vld [vmem:[#allocation2 + $0x68] sm:$0xff]  ;;  %v651_v49 = vadd.f32 %v788_v18, %v628_v47  ;;  %666 = vst.msk [vmem:[%s1097_s29 + $0x70] sm:$0xff] %vm592_vm1, %v650_v48 }
 0x143   : > { %659 = vst.msk [vmem:[%s1097_s29 + $0x38] sm:$0xff] %vm592_vm1, %v643_v33  ;;  %v649_v45 = vadd.f32 %v788_v18, %v626_v42  ;;  %664 = vst.msk [vmem:[%s1097_s29 + $0x60] sm:$0xff] %vm592_vm1, %v648_v44 }
 0x144   : > { %657 = vst.msk [vmem:[%s1097_s29 + $0x28] sm:$0xff] %vm592_vm1, %v641_v31  ;;  %667 = vst.msk [vmem:[%s1097_s29 + $0x78] sm:$0xff] %vm592_vm1, %v651_v49 }
 0x145   : > { %665 = vst.msk [vmem:[%s1097_s29 + $0x68] sm:$0xff] %vm592_vm1, %v649_v45 }
 0x146 PF: > { %s13_s18 = sadd.s32 1, %s983_s18   ;;  %s1211_s12 = smov %s963_s13 }
 0x147   : > { %p10_p0 = scmp.ge.s32.totalorder %s13_s18, 18   ;;  %s1212_s13 = smov %s1057_s25 }
 0x148   : > { %s1213_s14 = smov %s975_s16  ;;  %s1214_s15 = smov %s979_s17 }
 0x149   : > { %s1215_s16 = smov %s1218_s19  ;;  %s1216_s17 = smov %s1222_s20 }
 0x14a   :  { %12 = sbr.rel (!%p10_p0) target bundleno = 4 (0x4), region = 119 }

// kernel: vgcn_encoder.4
= control target key start
LH: loop header
LB: loop body
LE: loop exit
PB: predicated region body
PF: predicated region fallthrough
CT: control target
= control target key end

     0   :  { %s1428_s15 = smov 0   ;;  %s1430_s16 = smov 0   ;;  %s1657_s0 = inlined_call_operand.vmem [shape: bf16[512,512], index: 0, kind: input, shape index: {}]   ;;  %s1658_s1 = inlined_call_operand.vmem [shape: bf16[512,32], index: 1, kind: input, shape index: {}]   ;;  %s1659_s2 = inlined_call_operand.vmem [shape: f32[1,32], index: 2, kind: input, shape index: {}]   ;;  %s1660_s3 = inlined_call_operand.vmem [shape: f32[32,32], index: 3, kind: input, shape index: {}]   ;;  %s1661_s4 = inlined_call_operand.vmem [shape: bf16[512,32], index: 4, kind: output, shape index: {}]  }
   0x1   :  { %s1432_s17 = smov 0   ;;  %s1434_s18 = smov 0  }
   0x2   :  { %s1436_s19 = smov 0   ;;  %s1438_s20 = smov 0  }
   0x3   :  { %s1440_s21 = smov 0  }
   0x4 LB: > { %s23_s22 = sadd.s32 1, %s1392_s19  ;;  %s26_s23 = sadd.s32 1, %s1396_s20  ;;  %s1400_s21 = sphi %s1440_s21, %s14_s21   ;;  %s1396_s20 = sphi %s1438_s20, %s1667_s20   ;;  %s1392_s19 = sphi %s1436_s19, %s1666_s19   ;;  %s1388_s18 = sphi %s1434_s18, %s1665_s18   ;;  %s1384_s17 = sphi %s1432_s17, %s1664_s17   ;;  %s1380_s16 = sphi %s1430_s16, %s1663_s16   ;;  %s1376_s15 = sphi %s1428_s15, %s1662_s15  }
   0x5   : > { %p24_p0 = scmp.ge.s32.totalorder %s23_s22, 4  ;;  %p42_p1 = scmp.ne.s32.totalorder %s1380_s16, %s1376_s15 }
   0x6   : > { %p43_p2 = scmp.eq.s32.totalorder %s1400_s21, 0  ;;  %s35_s27 = sadd.s32 1, %s1380_s16 }
   0x7   : > { %s1669_s22 = smov (%p24_p0, %s23_s22), 0  ;;  %s1671_s23 = smov (!%p24_p0, %s26_s23), %s1396_s20 }
   0x8   : > { %p44_p3 = por %p43_p2, %p42_p1  ;;  %p28_p4 = scmp.ge.s32.totalorder %s1671_s23, 4 }
   0x9   : > { %s31_s24 = ssub.s32 %s1392_s19, %s1669_s22  ;;  %p1064_p6 = scmp.ge.s32.totalorder %s1400_s21, 16 }
   0xa   : > { %s1673_s23 = smov (%p28_p4, %s1671_s23), 0 }
   0xb   : > { %s30_s25 = ssub.s32 %s1396_s20, %s1673_s23  ;;  %168 = sbr.rel (%p1064_p6) target bundleno = 35 (0x23), region = 24 }
   0xc   : > { %s32_s26 = sor.u32 %s31_s24, %s30_s25 }
   0xd   : > { %p33_p5 = scmp.eq.s32.totalorder %s32_s26, 0 }
   0xf   : > { %s1479_s28 = scalar_select %p33_p5, %s1380_s16, %s35_s27  }
  0x12   : > { %171 = sbr.rel (!%p44_p3) target bundleno = 35 (0x23), region = 28  ;;  %s173_s29 = sand.u32 (%p44_p3), 1, %s1380_s16  }
  0x13   : > { %s1128_s30 = sshll.u32 (%p44_p3), %s1396_s20, 6  ;;  %s1065_s5 = sshll.u32 (%p44_p3), %s173_s29, 6 }
  0x14   : > { %s178_s6 = sadd.s32 (%p44_p3), %s1392_s19, %s1128_s30  ;;  %s175_s11 = scalar_lea.vmem (%p44_p3), [#allocation3], %s1065_s5 }
  0x15   : > { %s1068_s7 = sshll.u32 (%p44_p3), %s178_s6, 2 }
  0x16   : > { %s1488_s10 = scalar_lea.vmem (%p44_p3), %s1657_s0, %s1068_s7 }
  0x17   : > { %v196_v0 = vld [vmem:[%s1488_s10] sm:$0xf] (%p44_p3)  ;;  %v198_v1 = vld [vmem:[%s1488_s10 + $0x10] sm:$0xf] (%p44_p3) }
  0x18   : > { %v200_v2 = vld [vmem:[%s1488_s10 + $0x20] sm:$0xf] (%p44_p3)  ;;  %197 = vst [vmem:[%s175_s11] sm:$0xf] (%p44_p3), %v196_v0  ;;  %199 = vst [vmem:[%s175_s11 + $0x4] sm:$0xf] (%p44_p3), %v198_v1 }
  0x19   : > { %201 = vst [vmem:[%s175_s11 + $0x8] sm:$0xf] %v200_v2  ;;  %v202_v3 = vld [vmem:[%s1488_s10 + $0x30] sm:$0xf]  ;;  %v204_v4 = vld [vmem:[%s1488_s10 + $0x40] sm:$0xf] }
  0x1a   : > { %v206_v5 = vld [vmem:[%s1488_s10 + $0x50] sm:$0xf]  ;;  %203 = vst [vmem:[%s175_s11 + $0xc] sm:$0xf] %v202_v3  ;;  %205 = vst [vmem:[%s175_s11 + $0x10] sm:$0xf] %v204_v4 }
  0x1b   : > { %207 = vst [vmem:[%s175_s11 + $0x14] sm:$0xf] %v206_v5  ;;  %v208_v6 = vld [vmem:[%s1488_s10 + $0x60] sm:$0xf]  ;;  %v210_v7 = vld [vmem:[%s1488_s10 + $0x70] sm:$0xf] }
  0x1c   : > { %v212_v8 = vld [vmem:[%s1488_s10 + $0x80] sm:$0xf]  ;;  %209 = vst [vmem:[%s175_s11 + $0x18] sm:$0xf] %v208_v6  ;;  %211 = vst [vmem:[%s175_s11 + $0x1c] sm:$0xf] %v210_v7 }
  0x1d   : > { %213 = vst [vmem:[%s175_s11 + $0x20] sm:$0xf] %v212_v8  ;;  %v214_v9 = vld [vmem:[%s1488_s10 + $0x90] sm:$0xf]  ;;  %v216_v10 = vld [vmem:[%s1488_s10 + $0xa0] sm:$0xf] }
  0x1e   : > { %v218_v11 = vld [vmem:[%s1488_s10 + $0xb0] sm:$0xf]  ;;  %215 = vst [vmem:[%s175_s11 + $0x24] sm:$0xf] %v214_v9  ;;  %217 = vst [vmem:[%s175_s11 + $0x28] sm:$0xf] %v216_v10 }
  0x1f   : > { %219 = vst [vmem:[%s175_s11 + $0x2c] sm:$0xf] %v218_v11  ;;  %v220_v12 = vld [vmem:[%s1488_s10 + $0xc0] sm:$0xf]  ;;  %v222_v13 = vld [vmem:[%s1488_s10 + $0xd0] sm:$0xf] }
  0x20   : > { %v224_v14 = vld [vmem:[%s1488_s10 + $0xe0] sm:$0xf]  ;;  %221 = vst [vmem:[%s175_s11 + $0x30] sm:$0xf] %v220_v12  ;;  %223 = vst [vmem:[%s175_s11 + $0x34] sm:$0xf] %v222_v13 }
  0x21   : > { %225 = vst [vmem:[%s175_s11 + $0x38] sm:$0xf] %v224_v14  ;;  %v226_v15 = vld [vmem:[%s1488_s10 + $0xf0] sm:$0xf] }
  0x22   : > { %227 = vst [vmem:[%s175_s11 + $0x3c] sm:$0xf] %v226_v15 }
  0x23 PF: > { %p1069_p7 = scmp.ge.s32.totalorder %s1400_s21, 1  ;;  %p290_p8 = scmp.lt.s32.totalorder %s1400_s21, 17 }
  0x25   : > { %p291_p9 = pnand %p1069_p7, %p290_p8 }
  0x26   : > { %s297_s12 = sand.u32 (!%p291_p9), 1, %s1376_s15   ;;  %s1071_s13 = sshll.u32 (!%p291_p9), %s1384_s17, 4 }
  0x27   : > { %294 = sbr.rel (%p291_p9) target bundleno = 547 (0x223), region = 73  ;;  %s1070_s14 = sshll.u32 (!%p291_p9), %s297_s12, 6 }
  0x28   : > { %p329_p10 = scmp.lt.s32.totalorder (!%p291_p9), %s1071_s13, 63  ;;  %s1073_s24 = sshll.u32 (!%p291_p9), %s1388_s18, 4 }
  0x29   : > { %p335_p11 = scmp.lt.s32.totalorder (!%p291_p9), %s1073_s24, 63  ;;  %s1521_s15 = scalar_lea.vmem (!%p291_p9), [#allocation3], %s1070_s14 }
  0x2a   : > { %p1075_p12 = scmp.ne.s32.totalorder (!%p291_p9), %s1384_s17, 0 }
  0x2e   : > { %s1675_s13 = smov (!%p329_p10, %s1071_s13), 63  ;;  %s1677_s24 = smov (!%p335_p11, %s1073_s24), 63 }
  0x2f   : > { %s1072_s25 = sshll.u32 %s1675_s13, 2  ;;  %s1074_s30 = sshll.u32 %s1677_s24, 2  ;;  %vm345_vm0 = vcmask (!%p1075_p12), 261120   ;;  %v1402_v16 = vmov (!%p1075_p12), 0.0  }
  0x30   : > { %s1514_s29 = scalar_lea.vmem %s1658_s1, %s1072_s25  ;;  %s1519_s7 = scalar_lea.vmem %s1661_s4, %s1074_s30  ;;  %346 = vst.msk [vmem:[#allocation2] sm:$0xff] (!%p1075_p12), %vm345_vm0, %v1402_v16  ;;  %347 = vst.msk [vmem:[#allocation2 + $0x8] sm:$0xff] (!%p1075_p12), %vm345_vm0, %v1402_v16 }
  0x31   : > { %344 = sbr.rel (%p1075_p12) target bundleno = 56 (0x38), region = 81  ;;  %348 = vst.msk [vmem:[#allocation2 + $0x10] sm:$0xff] (!%p1075_p12), %vm345_vm0, %v1402_v16  ;;  %349 = vst.msk [vmem:[#allocation2 + $0x18] sm:$0xff] (!%p1075_p12), %vm345_vm0, %v1402_v16 }
  0x32   : > { %350 = vst.msk [vmem:[#allocation2 + $0x20] sm:$0xff] (!%p1075_p12), %vm345_vm0, %v1402_v16  ;;  %351 = vst.msk [vmem:[#allocation2 + $0x28] sm:$0xff] (!%p1075_p12), %vm345_vm0, %v1402_v16 }
  0x33   : > { %352 = vst.msk [vmem:[#allocation2 + $0x30] sm:$0xff] (!%p1075_p12), %vm345_vm0, %v1402_v16  ;;  %353 = vst.msk [vmem:[#allocation2 + $0x38] sm:$0xff] (!%p1075_p12), %vm345_vm0, %v1402_v16 }
  0x34   : > { %354 = vst.msk [vmem:[#allocation2 + $0x40] sm:$0xff] (!%p1075_p12), %vm345_vm0, %v1402_v16  ;;  %355 = vst.msk [vmem:[#allocation2 + $0x48] sm:$0xff] (!%p1075_p12), %vm345_vm0, %v1402_v16 }
  0x35   : > { %356 = vst.msk [vmem:[#allocation2 + $0x50] sm:$0xff] (!%p1075_p12), %vm345_vm0, %v1402_v16  ;;  %357 = vst.msk [vmem:[#allocation2 + $0x58] sm:$0xff] (!%p1075_p12), %vm345_vm0, %v1402_v16 }
  0x36   : > { %358 = vst.msk [vmem:[#allocation2 + $0x60] sm:$0xff] (!%p1075_p12), %vm345_vm0, %v1402_v16  ;;  %359 = vst.msk [vmem:[#allocation2 + $0x68] sm:$0xff] (!%p1075_p12), %vm345_vm0, %v1402_v16 }
  0x37   : > { %360 = vst.msk [vmem:[#allocation2 + $0x70] sm:$0xff] (!%p1075_p12), %vm345_vm0, %v1402_v16  ;;  %361 = vst.msk [vmem:[#allocation2 + $0x78] sm:$0xff] (!%p1075_p12), %vm345_vm0, %v1402_v16 }
  0x38 PF: > { %v1330_v17 = vld [vmem:[%s1514_s29] sm:$0xff]   ;;  %v1331_v18 = vld [vmem:[%s1514_s29 + $0x8] sm:$0xff]   ;;  %v1332_v19 = vld [vmem:[%s1514_s29 + $0x10] sm:$0xff]   ;;  %vm619_vm1 = vcmask 261120   ;;  %p1092_p13 = scmp.ne.s32.totalorder %s1384_s17, 3 }
  0x39   : > { %1181 = vmatprep.subr.bf16.mxu0 %v1330_v17  ;;  %1253 = vmatprep.subr.bf16.mxu1 %v1330_v17  ;;  %v1333_v20 = vld [vmem:[%s1514_s29 + $0x18] sm:$0xff]   ;;  %v1338_v21 = vld [vmem:[%s1521_s15] sm:$0xff]   ;;  %v1335_v24 = vld [vmem:[%s1514_s29 + $0x28] sm:$0xff]   ;;  %vm956_vm2 = vcmask (!%p1092_p13), 257024  }
  0x3a   : > { %1182 = vmatpush3.bf16.msra.mxu0 %v1330_v17  ;;  %1261 = vmatpush3.bf16.msra.mxu1 %v1330_v17  ;;  %v1339_v22 = vld [vmem:[%s1521_s15 + $0x20] sm:$0xff]   ;;  %v1336_v25 = vld [vmem:[%s1514_s29 + $0x30] sm:$0xff]   ;;  %v1337_v26 = vld [vmem:[%s1514_s29 + $0x38] sm:$0xff]  }
  0x3b   : > { %1183 = vmatprep.subr.bf16.mxu0 %v1331_v18  ;;  %1254 = vmatprep.subr.bf16.mxu1 %v1331_v18  ;;  %v1334_v23 = vld [vmem:[%s1514_s29 + $0x20] sm:$0xff]   ;;  %v1340_v27 = vld [vmem:[%s1521_s15 + $0x8] sm:$0xff]   ;;  %v1342_v29 = vld [vmem:[%s1521_s15 + $0x10] sm:$0xff]  }
  0x3c   : > { %1197 = vmatprep.mubr.bf16.mxu0 %v1338_v21  ;;  %1205 = vmatprep.mubr.bf16.mxu1 %v1339_v22  ;;  %v1341_v28 = vld [vmem:[%s1521_s15 + $0x28] sm:$0xff]   ;;  %v1343_v30 = vld [vmem:[%s1521_s15 + $0x30] sm:$0xff]   ;;  %v1344_v31 = vld [vmem:[%s1521_s15 + $0x18] sm:$0xff]  }
  0x3d   : > { %v1345_v32 = vld [vmem:[%s1521_s15 + $0x38] sm:$0xff]   ;;  %v364_v33 = vld [vmem:[#allocation2 + $0x10] sm:$0xff]  ;;  %v362_v35 = vld [vmem:[#allocation2] sm:$0xff] }
  0x3e   : > { %1184 = vmatpush3.bf16.msra.mxu0 %v1331_v18  ;;  %1262 = vmatpush3.bf16.msra.mxu1 %v1331_v18  ;;  %v372_v34 = vld [vmem:[#allocation2 + $0x50] sm:$0xff]  ;;  %v370_v36 = vld [vmem:[#allocation2 + $0x40] sm:$0xff]  ;;  %v365_v39 = vld [vmem:[#allocation2 + $0x18] sm:$0xff] }
  0x3f   : > { %1185 = vmatprep.subr.bf16.mxu0 %v1332_v19  ;;  %1255 = vmatprep.subr.bf16.mxu1 %v1332_v19  ;;  %v373_v40 = vld [vmem:[#allocation2 + $0x58] sm:$0xff]  ;;  %v363_v45 = vld [vmem:[#allocation2 + $0x8] sm:$0xff]  ;;  %v368_v57 = vld [vmem:[#allocation2 + $0x30] sm:$0xff] }
  0x40   : > { %v371_v46 = vld [vmem:[#allocation2 + $0x48] sm:$0xff]  ;;  %v376_v58 = vld [vmem:[#allocation2 + $0x70] sm:$0xff]  ;;  %v366_v59 = vld [vmem:[#allocation2 + $0x20] sm:$0xff] }
  0x41   : > { %v374_v60 = vld [vmem:[#allocation2 + $0x60] sm:$0xff]  ;;  %v369_v63 = vld [vmem:[#allocation2 + $0x38] sm:$0xff]  ;;  %v367_v5 = vld [vmem:[#allocation2 + $0x28] sm:$0xff] }
  0x42   : > { %1186 = vmatpush3.bf16.msra.mxu0 %v1332_v19  ;;  %1263 = vmatpush3.bf16.msra.mxu1 %v1332_v19  ;;  %v377_v0 = vld [vmem:[#allocation2 + $0x78] sm:$0xff]  ;;  %v375_v6 = vld [vmem:[#allocation2 + $0x68] sm:$0xff]  ;;  %v695_v17 = vld [vmem:[%s1660_s3] sm:$0xff] (!%p1092_p13) }
  0x43   : > { %1187 = vmatprep.subr.bf16.mxu0 %v1333_v20  ;;  %1256 = vmatprep.subr.bf16.mxu1 %v1333_v20  ;;  %v696_v18 = vld [vmem:[%s1660_s3 + $0x8] sm:$0xff] (!%p1092_p13)  ;;  %v697_v19 = vld [vmem:[%s1660_s3 + $0x10] sm:$0xff] (!%p1092_p13)  ;;  %v698_v21 = vld [vmem:[%s1660_s3 + $0x18] sm:$0xff] (!%p1092_p13) }
  0x46   : > { %1188 = vmatpush3.bf16.msra.mxu0 %v1333_v20  ;;  %1264 = vmatpush3.bf16.msra.mxu1 %v1333_v20  ;;  %v1245_v20 = vpack.c.bf16 (!%p1092_p13), %v696_v18, %v695_v17 }
  0x47   : > { %1189 = vmatprep.subr.bf16.mxu0 %v1334_v23  ;;  %1257 = vmatprep.subr.bf16.mxu1 %v1334_v23 }
  0x4a   : > { %1190 = vmatpush3.bf16.msra.mxu0 %v1334_v23  ;;  %1265 = vmatpush3.bf16.msra.mxu1 %v1334_v23  ;;  %v1093_v23 = vld [vmem:[%s1659_s2] ss:$0 sm:$0xff] (!%p1092_p13) }
  0x4b   : > { %1191 = vmatprep.subr.bf16.mxu0 %v1335_v24  ;;  %1258 = vmatprep.subr.bf16.mxu1 %v1335_v24 }
  0x4e   : > { %1192 = vmatpush3.bf16.msra.mxu0 %v1335_v24  ;;  %1266 = vmatpush3.bf16.msra.mxu1 %v1335_v24  ;;  %v1249_v24 = vpack.c.bf16 (!%p1092_p13), %v698_v21, %v697_v19 }
  0x4f   : > { %1193 = vmatprep.subr.bf16.mxu0 %v1336_v25  ;;  %1259 = vmatprep.subr.bf16.mxu1 %v1336_v25 }
  0x52   : > { %1194 = vmatpush3.bf16.msra.mxu0 %v1336_v25  ;;  %1267 = vmatpush3.bf16.msra.mxu1 %v1336_v25 }
  0x53   : > { %1195 = vmatprep.subr.bf16.mxu0 %v1337_v26  ;;  %1260 = vmatprep.subr.bf16.mxu1 %v1337_v26 }
  0x56   : > { %1196 = vmatpush3.bf16.msra.mxu0 %v1337_v26  ;;  %1268 = vmatpush3.bf16.msra.mxu1 %v1337_v26 }
  0x57   : > { %1246 = vmatprep.subr.bf16.mxu0 (!%p1092_p13), %v1245_v20  ;;  %1269 = vmatprep.subr.bf16.mxu1 (!%p1092_p13), %v1245_v20 }
  0x59   : > { %1198 = vmatmul.mubr.bf16.vlgmr.msra.gmra.mrb[0].mxu0 %v1340_v27  ;;  %1206 = vmatmul.mubr.bf16.vlgmr.msra.gmra.mrb[0].mxu1 %v1341_v28 }
  0x5a   : > { %1201 = vmatprep.mubr.bf16.mxu0 %v1342_v29  ;;  %1209 = vmatprep.mubr.bf16.mxu1 %v1343_v30 }
  0x5b   : > { %1248 = vmatpush3.bf16.msra.mxu0 (!%p1092_p13), %v1245_v20  ;;  %1271 = vmatpush3.bf16.msra.mxu1 (!%p1092_p13), %v1245_v20 }
  0x5c   : > { %1250 = vmatprep.subr.bf16.mxu0 (!%p1092_p13), %v1249_v24  ;;  %1270 = vmatprep.subr.bf16.mxu1 (!%p1092_p13), %v1249_v24 }
  0x5f   : > { %1252 = vmatpush3.bf16.msra.mxu0 (!%p1092_p13), %v1249_v24  ;;  %1272 = vmatpush3.bf16.msra.mxu1 (!%p1092_p13), %v1249_v24 }
  0x61   : > { %1202 = vmatmul.mubr.bf16.gmra.mrb[4].mxu0 %v1344_v31  ;;  %1210 = vmatmul.mubr.bf16.gmra.mrb[4].mxu1 %v1345_v32 }
 0x12c   : > { %v1199_v37 = vpop.f32.mrb[0].mxu0  ;;  %v1207_v38 = vpop.f32.mrb[0].mxu1 }
 0x12d   : > { %v605_v41 = vadd.f32 %v1199_v37, %v364_v33  ;;  %v613_v42 = vadd.f32 %v1207_v38, %v372_v34  ;;  %v540_v43 = vpop.f32.mrb[1].mxu0  ;;  %v572_v44 = vpop.f32.mrb[1].mxu1 }
 0x12e   : > { %v603_v47 = vadd.f32 %v540_v43, %v362_v35  ;;  %v611_v48 = vadd.f32 %v572_v44, %v370_v36  ;;  %v1200_v49 = vpop.f32.mrb[2].mxu0  ;;  %v1208_v50 = vpop.f32.mrb[2].mxu1 }
 0x12f   : > { %622 = vst.msk [vmem:[#allocation2 + $0x10] sm:$0xff] %vm619_vm1, %v605_v41  ;;  %630 = vst.msk [vmem:[#allocation2 + $0x50] sm:$0xff] %vm619_vm1, %v613_v42  ;;  %v606_v51 = vadd.f32 %v1200_v49, %v365_v39  ;;  %v614_v52 = vadd.f32 %v1208_v50, %v373_v40  ;;  %v543_v53 = vpop.f32.mrb[3].mxu0  ;;  %v575_v54 = vpop.f32.mrb[3].mxu1 }
 0x130   : > { %620 = vst.msk [vmem:[#allocation2] sm:$0xff] %vm619_vm1, %v603_v47  ;;  %628 = vst.msk [vmem:[#allocation2 + $0x40] sm:$0xff] %vm619_vm1, %v611_v48  ;;  %v604_v55 = vadd.f32 %v543_v53, %v363_v45  ;;  %v612_v56 = vadd.f32 %v575_v54, %v371_v46 }
 0x131   : > { %623 = vst.msk [vmem:[#allocation2 + $0x18] sm:$0xff] %vm619_vm1, %v606_v51  ;;  %631 = vst.msk [vmem:[#allocation2 + $0x58] sm:$0xff] %vm619_vm1, %v614_v52 }
 0x132   : > { %621 = vst.msk [vmem:[#allocation2 + $0x8] sm:$0xff] %vm619_vm1, %v604_v55  ;;  %629 = vst.msk [vmem:[#allocation2 + $0x48] sm:$0xff] %vm619_vm1, %v612_v56 }
 0x134   : > { %v1203_v61 = vpop.f32.mrb[4].mxu0  ;;  %v1211_v62 = vpop.f32.mrb[4].mxu1  ;;  %639 = sbr.rel (%p1092_p13) target bundleno = 547 (0x223), region = 85 }
 0x135   : > { %v609_v1 = vadd.f32 %v1203_v61, %v368_v57  ;;  %v617_v2 = vadd.f32 %v1211_v62, %v376_v58  ;;  %v556_v3 = vpop.f32.mrb[5].mxu0  ;;  %v588_v4 = vpop.f32.mrb[5].mxu1 }
 0x136   : > { %v607_v7 = vadd.f32 %v556_v3, %v366_v59  ;;  %v615_v8 = vadd.f32 %v588_v4, %v374_v60  ;;  %v1204_v9 = vpop.f32.mrb[6].mxu0  ;;  %v1212_v10 = vpop.f32.mrb[6].mxu1  ;;  %v642_v32 = vld [vmem:[#allocation2 + $0x10] sm:$0xff] (!%p1092_p13) }
 0x137   : > { %626 = vst.msk [vmem:[#allocation2 + $0x30] sm:$0xff] %vm619_vm1, %v609_v1  ;;  %634 = vst.msk [vmem:[#allocation2 + $0x70] sm:$0xff] %vm619_vm1, %v617_v2  ;;  %v610_v11 = vadd.f32 %v1204_v9, %v369_v63  ;;  %v618_v12 = vadd.f32 %v1212_v10, %v377_v0  ;;  %v559_v13 = vpop.f32.mrb[7].mxu0  ;;  %v591_v14 = vpop.f32.mrb[7].mxu1  ;;  %v640_v22 = vld [vmem:[#allocation2] sm:$0xff] (!%p1092_p13)  ;;  %v650_v33 = vld [vmem:[#allocation2 + $0x50] sm:$0xff] (!%p1092_p13)  ;;  %v665_v35 = vadd.f32 (!%p1092_p13), %v1093_v23, %v642_v32 }
 0x138   : > { %624 = vst.msk [vmem:[#allocation2 + $0x20] sm:$0xff] %vm619_vm1, %v607_v7  ;;  %632 = vst.msk [vmem:[#allocation2 + $0x60] sm:$0xff] %vm619_vm1, %v615_v8  ;;  %v608_v15 = vadd.f32 %v559_v13, %v367_v5  ;;  %v616_v16 = vadd.f32 %v591_v14, %v375_v6  ;;  %v663_v25 = vadd.f32 (!%p1092_p13), %v1093_v23, %v640_v22  ;;  %v648_v26 = vld [vmem:[#allocation2 + $0x40] sm:$0xff] (!%p1092_p13)  ;;  %v643_v37 = vld [vmem:[#allocation2 + $0x18] sm:$0xff] (!%p1092_p13) }
 0x139   : > { %627 = vst.msk [vmem:[#allocation2 + $0x38] sm:$0xff] %vm619_vm1, %v610_v11  ;;  %635 = vst.msk [vmem:[#allocation2 + $0x78] sm:$0xff] %vm619_vm1, %v618_v12  ;;  %v641_v27 = vld [vmem:[#allocation2 + $0x8] sm:$0xff] (!%p1092_p13)  ;;  %v671_v29 = vadd.f32 (!%p1092_p13), %v1093_v23, %v648_v26  ;;  %v673_v36 = vadd.f32 (!%p1092_p13), %v1093_v23, %v650_v33  ;;  %v651_v38 = vld [vmem:[#allocation2 + $0x58] sm:$0xff] (!%p1092_p13)  ;;  %v666_v44 = vadd.f32 (!%p1092_p13), %v1093_v23, %v643_v37  ;;  %v681_v46 = vmax.f32 (!%p1092_p13), %v665_v35, 0.0 }
 0x13a   : > { %625 = vst.msk [vmem:[#allocation2 + $0x28] sm:$0xff] %vm619_vm1, %v608_v15  ;;  %633 = vst.msk [vmem:[#allocation2 + $0x68] sm:$0xff] %vm619_vm1, %v616_v16  ;;  %v649_v28 = vld [vmem:[#allocation2 + $0x48] sm:$0xff] (!%p1092_p13)  ;;  %v664_v30 = vadd.f32 (!%p1092_p13), %v1093_v23, %v641_v27  ;;  %v679_v34 = vmax.f32 (!%p1092_p13), %v663_v25, 0.0  ;;  %v674_v45 = vadd.f32 (!%p1092_p13), %v1093_v23, %v651_v38 }
 0x13b   : > { %v672_v31 = vadd.f32 %v1093_v23, %v649_v28  ;;  %v687_v39 = vmax.f32 %v671_v29, 0.0  ;;  %v689_v47 = vmax.f32 %v673_v36, 0.0  ;;  %v682_v54 = vmax.f32 %v666_v44, 0.0 }
 0x13c   : > { %1221 = vmatprep.mubr.msk.f32.mxu0 %vm619_vm1, %v679_v34  ;;  %v680_v42 = vmax.f32 %v664_v30, 0.0  ;;  %v690_v55 = vmax.f32 %v674_v45, 0.0 }
 0x13d   : > { %1233 = vmatprep.mubr.msk.f32.mxu1 %vm619_vm1, %v687_v39  ;;  %v688_v43 = vmax.f32 %v672_v31, 0.0 }
 0x13e   : > { %v646_v52 = vld [vmem:[#allocation2 + $0x30] sm:$0xff]  ;;  %1222 = vmatmul.mubr.msk.f32.vlgmr.msra.gmra.mrb[0].mxu0 %vm619_vm1, %v680_v42 }
 0x13f   : > { %v644_v40 = vld [vmem:[#allocation2 + $0x20] sm:$0xff]  ;;  %v654_v53 = vld [vmem:[#allocation2 + $0x70] sm:$0xff]  ;;  %1234 = vmatmul.mubr.msk.f32.vlgmr.msra.gmra.mrb[0].mxu1 %vm619_vm1, %v688_v43  ;;  %1224 = vmatprep.mubr.msk.f32.mxu0 %vm619_vm1, %v681_v46  ;;  %v669_v60 = vadd.f32 %v1093_v23, %v646_v52 }
 0x140   : > { %v652_v41 = vld [vmem:[#allocation2 + $0x60] sm:$0xff]  ;;  %v667_v48 = vadd.f32 %v1093_v23, %v644_v40  ;;  %1236 = vmatprep.mubr.msk.f32.mxu1 %vm619_vm1, %v689_v47  ;;  %v677_v61 = vadd.f32 %v1093_v23, %v654_v53  ;;  %v647_v62 = vld [vmem:[#allocation2 + $0x38] sm:$0xff] }
 0x141   : > { %v675_v49 = vadd.f32 %v1093_v23, %v652_v41  ;;  %v645_v50 = vld [vmem:[#allocation2 + $0x28] sm:$0xff]  ;;  %v655_v63 = vld [vmem:[#allocation2 + $0x78] sm:$0xff]  ;;  %v670_v2 = vadd.f32 %v1093_v23, %v647_v62  ;;  %v685_v4 = vmax.f32 %v669_v60, 0.0 }
 0x142   : > { %v653_v51 = vld [vmem:[#allocation2 + $0x68] sm:$0xff]  ;;  %v668_v56 = vadd.f32 %v1093_v23, %v645_v50  ;;  %v683_v58 = vmax.f32 %v667_v48, 0.0  ;;  %1225 = vmatmul.mubr.msk.f32.gmra.mrb[2].mxu0 %vm619_vm1, %v682_v54  ;;  %v678_v3 = vadd.f32 %v1093_v23, %v655_v63  ;;  %v693_v5 = vmax.f32 %v677_v61, 0.0 }
 0x143   : > { %v676_v57 = vadd.f32 %v1093_v23, %v653_v51  ;;  %v691_v59 = vmax.f32 %v675_v49, 0.0  ;;  %1237 = vmatmul.mubr.msk.f32.gmra.mrb[2].mxu1 %vm619_vm1, %v690_v55  ;;  %v686_v6 = vmax.f32 %v670_v2, 0.0 }
 0x144   : > { %v684_v0 = vmax.f32 %v668_v56, 0.0  ;;  %1227 = vmatprep.mubr.msk.f32.mxu0 %vm619_vm1, %v683_v58  ;;  %v694_v7 = vmax.f32 %v678_v3, 0.0 }
 0x145   : > { %v692_v1 = vmax.f32 %v676_v57, 0.0  ;;  %1239 = vmatprep.mubr.msk.f32.mxu1 %vm619_vm1, %v691_v59 }
 0x146   : > { %1228 = vmatmul.mubr.msk.f32.gmra.mrb[4].mxu0 %vm619_vm1, %v684_v0 }
 0x147   : > { %1240 = vmatmul.mubr.msk.f32.gmra.mrb[4].mxu1 %vm619_vm1, %v692_v1  ;;  %1230 = vmatprep.mubr.msk.f32.mxu0 %vm619_vm1, %v685_v4 }
 0x148   : > { %1242 = vmatprep.mubr.msk.f32.mxu1 %vm619_vm1, %v693_v5 }
 0x14a   : > { %1231 = vmatmul.mubr.msk.f32.gmra.mrb[6].mxu0 %vm619_vm1, %v686_v6 }
 0x14b   : > { %1243 = vmatmul.mubr.msk.f32.gmra.mrb[6].mxu1 %vm619_vm1, %v694_v7 }
 0x211   : > { %v1223_v8 = vpop.f32.mrb[0].mxu0 }
 0x212   : > { %v1235_v9 = vpop.f32.mrb[0].mxu1  ;;  %v1130_v10 = vpack.c.bf16 %v1223_v8, %v1223_v8  ;;  %v813_v12 = vpop.f32.mrb[1].mxu0 }
 0x213   : > { %v1138_v11 = vpack.c.bf16 %v1235_v9, %v1235_v9  ;;  %v853_v13 = vpop.f32.mrb[1].mxu1  ;;  %v1129_v14 = vpack.c.bf16 %v813_v12, %v813_v12 }
 0x214   : > { %v1137_v15 = vpack.c.bf16 %v853_v13, %v853_v13  ;;  %958 = vst.msk [vmem:[%s1519_s7 + $0x4] sm:$0xf] %vm956_vm2, %v1130_v10 }
 0x215   : > { %966 = vst.msk [vmem:[%s1519_s7 + $0x24] sm:$0xf] %vm956_vm2, %v1138_v11  ;;  %957 = vst.msk [vmem:[%s1519_s7] sm:$0xf] %vm956_vm2, %v1129_v14  ;;  %v1226_v16 = vpop.f32.mrb[2].mxu0 }
 0x216   : > { %965 = vst.msk [vmem:[%s1519_s7 + $0x20] sm:$0xf] %vm956_vm2, %v1137_v15  ;;  %v1238_v17 = vpop.f32.mrb[2].mxu1  ;;  %v1132_v18 = vpack.c.bf16 %v1226_v16, %v1226_v16  ;;  %v823_v20 = vpop.f32.mrb[3].mxu0 }
 0x217   : > { %v1140_v19 = vpack.c.bf16 %v1238_v17, %v1238_v17  ;;  %v863_v21 = vpop.f32.mrb[3].mxu1  ;;  %v1131_v22 = vpack.c.bf16 %v823_v20, %v823_v20 }
 0x218   : > { %v1139_v23 = vpack.c.bf16 %v863_v21, %v863_v21  ;;  %960 = vst.msk [vmem:[%s1519_s7 + $0xc] sm:$0xf] %vm956_vm2, %v1132_v18 }
 0x219   : > { %968 = vst.msk [vmem:[%s1519_s7 + $0x2c] sm:$0xf] %vm956_vm2, %v1140_v19  ;;  %959 = vst.msk [vmem:[%s1519_s7 + $0x8] sm:$0xf] %vm956_vm2, %v1131_v22  ;;  %v1229_v24 = vpop.f32.mrb[4].mxu0 }
 0x21a   : > { %967 = vst.msk [vmem:[%s1519_s7 + $0x28] sm:$0xf] %vm956_vm2, %v1139_v23  ;;  %v1241_v25 = vpop.f32.mrb[4].mxu1  ;;  %v1134_v26 = vpack.c.bf16 %v1229_v24, %v1229_v24  ;;  %v833_v28 = vpop.f32.mrb[5].mxu0 }
 0x21b   : > { %v1142_v27 = vpack.c.bf16 %v1241_v25, %v1241_v25  ;;  %v873_v29 = vpop.f32.mrb[5].mxu1  ;;  %v1133_v30 = vpack.c.bf16 %v833_v28, %v833_v28 }
 0x21c   : > { %v1141_v31 = vpack.c.bf16 %v873_v29, %v873_v29  ;;  %962 = vst.msk [vmem:[%s1519_s7 + $0x14] sm:$0xf] %vm956_vm2, %v1134_v26 }
 0x21d   : > { %970 = vst.msk [vmem:[%s1519_s7 + $0x34] sm:$0xf] %vm956_vm2, %v1142_v27  ;;  %961 = vst.msk [vmem:[%s1519_s7 + $0x10] sm:$0xf] %vm956_vm2, %v1133_v30  ;;  %v1232_v32 = vpop.f32.mrb[6].mxu0 }
 0x21e   : > { %969 = vst.msk [vmem:[%s1519_s7 + $0x30] sm:$0xf] %vm956_vm2, %v1141_v31  ;;  %v1244_v33 = vpop.f32.mrb[6].mxu1  ;;  %v1136_v34 = vpack.c.bf16 %v1232_v32, %v1232_v32  ;;  %v843_v36 = vpop.f32.mrb[7].mxu0 }
 0x21f   : > { %v1144_v35 = vpack.c.bf16 %v1244_v33, %v1244_v33  ;;  %v883_v37 = vpop.f32.mrb[7].mxu1  ;;  %v1135_v38 = vpack.c.bf16 %v843_v36, %v843_v36 }
 0x220   : > { %v1143_v39 = vpack.c.bf16 %v883_v37, %v883_v37  ;;  %964 = vst.msk [vmem:[%s1519_s7 + $0x1c] sm:$0xf] %vm956_vm2, %v1136_v34 }
 0x221   : > { %972 = vst.msk [vmem:[%s1519_s7 + $0x3c] sm:$0xf] %vm956_vm2, %v1144_v35  ;;  %963 = vst.msk [vmem:[%s1519_s7 + $0x18] sm:$0xf] %vm956_vm2, %v1135_v38 }
 0x222   : > { %971 = vst.msk [vmem:[%s1519_s7 + $0x38] sm:$0xf] %vm956_vm2, %v1143_v39 }
 0x223 PF: > { %s14_s21 = sadd.s32 1, %s1400_s21   ;;  %s1662_s15 = smov %s1380_s16 }
 0x224   : > { %p11_p0 = scmp.ge.s32.totalorder %s14_s21, 18   ;;  %s1663_s16 = smov %s1479_s28 }
 0x225   : > { %s1664_s17 = smov %s1392_s19  ;;  %s1665_s18 = smov %s1396_s20 }
 0x226   : > { %s1666_s19 = smov %s1669_s22  ;;  %s1667_s20 = smov %s1673_s23 }
 0x227   :  { %13 = sbr.rel (!%p11_p0) target bundleno = 4 (0x4), region = 123 }

</bundles_post_ra>
